<compile_context>
chip_gen: v6e
topology: v6e:2x2x1
jax: 0.10.0
libtpu: 0.0.40
codegen_flags: <defaults>
</compile_context>

<pallas_src>
import functools
import math

import jax
import jax.numpy as jnp
from jax import lax
from jax.experimental import pallas as pl
from jax.experimental.pallas import tpu as pltpu


# --------------------------------------------------------------------------- #
# helpers
# --------------------------------------------------------------------------- #
def _const_block_spec(shape):
    """Grid-constant (weight / bias) block: resident once, single-buffered.

    Constant-index blocks never change across the grid, so they do not need
    double buffering; pl.Buffered(1) halves their VMEM residency (matters at
    production C on v7x's 64 MiB VMEM).  Falls back to the default buffering
    on jax versions without `pipeline_mode`.
    """
    index_map = lambda *_: (0,) * len(shape)
    try:
        return pl.BlockSpec(shape, index_map, pipeline_mode=pl.Buffered(1))
    except (TypeError, AttributeError):
        return pl.BlockSpec(shape, index_map)


def _default_vmem_limit():
    """~75% of physical VMEM, capped at 100 MiB.

    => ~96 MiB on v5e/v6e (128 MiB physical), ~48 MiB on v7x (64 MiB physical),
    leaving headroom for compiler-internal scratch and pipeline buffers.
    """
    try:
        cap = pltpu.get_tpu_info().vmem_capacity_bytes
    except Exception:
        cap = 64 * 1024 * 1024      # conservative fallback (v7x-sized)
    return int(min(0.75 * cap, 100 * 1024 * 1024))


# --------------------------------------------------------------------------- #
# kernel 1: fused q/k/v projection (+ batch swap for k/v via output index maps)
# --------------------------------------------------------------------------- #
def _qkv_proj_kernel(x_ref, wq_ref, wk_ref, wv_ref, q_ref, k_ref, v_ref):
    """Grid = (batch, seq_tile). Reads each hidden block once, 3 GEMMs, 3 writes."""
    x = x_ref[0]                                                       # (tp, C)
    q_ref[0] = jnp.dot(x, wq_ref[...],
                       preferred_element_type=jnp.float32).astype(q_ref.dtype)
    k_ref[0] = jnp.dot(x, wk_ref[...],
                       preferred_element_type=jnp.float32).astype(k_ref.dtype)
    v_ref[0] = jnp.dot(x, wv_ref[...],
                       preferred_element_type=jnp.float32).astype(v_ref.dtype)


# --------------------------------------------------------------------------- #
# kernel 2: flash attention + to_out[0] + bias + residual + rescale
# --------------------------------------------------------------------------- #
def _epi_flash_kernel(q_ref, k_ref, v_ref, res_ref, wo_ref, bo_ref, out_ref,
                      q_scr, m_scr, l_scr, acc_scr,
                      *, heads, head_dim, sm_scale, inv_rescale):
    """Grid = (batch, q_tile, kv_tile); kv_tile is the ("arbitrary") flash axis."""
    ki = pl.program_id(2)
    nk = pl.num_programs(2)
    cdt = q_ref.dtype      # MXU operand dtype == input dtype (bf16 stays bf16)

    # ---- per-(b, q_tile) init: cache softmax-scaled q, reset flash state ----
    @pl.when(ki == 0)
    def _init():
        # scale folded into q once per q tile (tq*C muls, not tq*tk per step)
        q_scr[...] = (q_ref[0].astype(jnp.float32) * sm_scale).astype(q_scr.dtype)
        m_scr[...] = jnp.full(m_scr.shape, -jnp.inf, dtype=m_scr.dtype)
        l_scr[...] = jnp.zeros(l_scr.shape, dtype=l_scr.dtype)
        acc_scr[...] = jnp.zeros(acc_scr.shape, dtype=acc_scr.dtype)

    # ---- every kv tile: online-softmax update (batched scratch writes) ----
    k = k_ref[0]                                                       # (tk, C)
    v = v_ref[0]                                                       # (tk, C)
    q = q_scr[...]                                                     # (tq, C)
    m_prev = m_scr[...]                                                # (tq, H)
    l_prev = l_scr[...]                                                # (tq, H)
    acc_prev = acc_scr[...]                                            # (tq, C)

    # Static unroll over heads (small here).  TODO(synk): at production heads
    # (16-24), switch to lax.fori_loop with a small unroll + pl.ds slices if a
    # bundle dump shows vreg spills from the per-head (tq, tk) live tiles.
    m_cols, l_cols, acc_cols = [], [], []
    for h in range(heads):
        sl = slice(h * head_dim, (h + 1) * head_dim)
        # q @ k^T (contract last dims) with f32 accumulation on the MXU
        s = lax.dot_general(q[:, sl], k[:, sl], (((1,), (1,)), ((), ())),
                            preferred_element_type=jnp.float32)        # (tq, tk)
        m_ph = m_prev[:, h:h + 1]
        m_nh = jnp.maximum(m_ph, jnp.max(s, axis=-1, keepdims=True))
        alpha = jnp.exp(m_ph - m_nh)
        # exp kept in f32: v5e's EUP has no bf16; on v6e/v7x a bf16 exp (~2x EUP
        # rate) is a follow-up only if a bundle dump shows the EUP slot binding.
        p = jnp.exp(s - m_nh)                                           # (tq, tk)
        l_cols.append(alpha * l_prev[:, h:h + 1]
                      + jnp.sum(p, axis=-1, keepdims=True))
        acc_cols.append(alpha * acc_prev[:, sl]
                        + jnp.dot(p.astype(cdt), v[:, sl],
                                  preferred_element_type=jnp.float32))
        m_cols.append(m_nh)

    # ONE full-width store per scratch per kv step (no per-head masked RMWs).
    m_scr[...] = jnp.concatenate(m_cols, axis=1)
    l_scr[...] = jnp.concatenate(l_cols, axis=1)
    acc_scr[...] = jnp.concatenate(acc_cols, axis=1)

    # ---- finalize on the last kv tile: normalize, to_out, residual, rescale ----
    @pl.when(ki == nk - 1)
    def _finalize():
        # approx reciprocal is an inference-path choice (EUP vrcp); use
        # approx=False if this path ever feeds training / tight-tolerance eval.
        inv_l = pl.reciprocal(l_scr[...], approx=True)                  # (tq, H)
        acc = acc_scr[...]                                              # (tq, C)
        attn = jnp.concatenate(
            [acc[:, h * head_dim:(h + 1) * head_dim] * inv_l[:, h:h + 1]
             for h in range(heads)], axis=1).astype(cdt)   # "to(query.dtype)"
        o = jnp.dot(attn, wo_ref[...], preferred_element_type=jnp.float32)
        o = o + bo_ref[...].astype(jnp.float32)            # to_out[0] bias
        o = o + res_ref[0].astype(jnp.float32)             # residual_connection
        out_ref[0] = (o * inv_rescale).astype(out_ref.dtype)


# --------------------------------------------------------------------------- #
# wrapper
# --------------------------------------------------------------------------- #
def epi_attn_processor(hidden_states, params, *, heads, rescale_output_factor=1.0,
                       attention_mask=None, kv_index=None, mono_direction=False,
                       fix_firstframe=False,
                       block_q=256, block_kv=256, block_proj=256,
                       return_aux=True):
    """Pallas implementation of EpiAttnProcessor.forward (default path).

    Notes:
      * block_kv=256 fills the 256-deep MXU on v6e/v7x; pass block_kv=128 on v5e.
      * Feed bf16 hidden_states/params for bf16 MXU operands (f32 accumulation).
    """
    if (attention_mask is not None or kv_index is not None
            or mono_direction or fix_firstframe):
        # TODO(synk): kv_index gather, mono_direction, fix_firstframe averaging and
        # masked attention are not implemented — fail loudly, never silently wrong.
        raise NotImplementedError(
            "epi_attn_processor: only the default path (no attention_mask, "
            "kv_index, mono_direction or fix_firstframe) is implemented.")

    B, N, C = hidden_states.shape
    assert B % 2 == 0, "epi chunk(2)-and-swap path needs an even batch"
    assert C % heads == 0
    head_dim = C // heads
    wq, wk, wv, wo, bo = params
    bo2 = bo.reshape(1, C)
    dt = hidden_states.dtype
    itemsize = jnp.dtype(dt).itemsize
    w_itemsize = jnp.dtype(wq.dtype).itemsize
    half = B // 2

    tq = min(block_q, N)
    tk = min(block_kv, N)
    tp = min(block_proj, N)
    assert N % tq == 0 and N % tk == 0 and N % tp == 0, \
        "sequence length must tile evenly (no ragged-tail handling)"
    nq, nk, npr = N // tq, N // tk, N // tp

    vmem_limit = _default_vmem_limit()
    w_spec = _const_block_spec((C, C))
    b_spec = _const_block_spec((1, C))

    # ------------------- kernel 1: q/k/v projection (runs once) ------------- #
    x_spec = pl.BlockSpec((1, tp, C), lambda b, i: (b, i, 0))
    q_out = pl.BlockSpec((1, tp, C), lambda b, i: (b, i, 0))
    # encoder_hidden_states = cat([chunk[1], chunk[0]]) along batch: K/V produced
    # from hidden block b land in output batch (b + B/2) % B — no HBM shuffle.
    kv_out = pl.BlockSpec((1, tp, C), lambda b, i: ((b + half) % B, i, 0))

    proj_cost = pl.CostEstimate(
        flops=int(6 * B * N * C * C),
        transcendentals=0,
        bytes_accessed=int(4 * B * N * C * itemsize + 3 * C * C * w_itemsize))

    q_full, k_full, v_full = pl.pallas_call(
        _qkv_proj_kernel,
        out_shape=(jax.ShapeDtypeStruct((B, N, C), dt),
                   jax.ShapeDtypeStruct((B, N, C), dt),
                   jax.ShapeDtypeStruct((B, N, C), dt)),
        grid_spec=pltpu.PrefetchScalarGridSpec(
            num_scalar_prefetch=0,
            grid=(B, npr),
            in_specs=[x_spec, w_spec, w_spec, w_spec],
            out_specs=(q_out, kv_out, kv_out)),
        compiler_params=pltpu.CompilerParams(
            dimension_semantics=("parallel", "parallel"),
            vmem_limit_bytes=vmem_limit),
        cost_estimate=proj_cost,
    )(hidden_states, wq, wk, wv)

    # ------------------- kernel 2: flash attention + to_out ----------------- #
    q_in = pl.BlockSpec((1, tq, C), lambda b, qi, ki: (b, qi, 0))
    kv_in = pl.BlockSpec((1, tk, C), lambda b, qi, ki: (b, ki, 0))
    res_in = pl.BlockSpec((1, tq, C), lambda b, qi, ki: (b, qi, 0))
    out_spec = pl.BlockSpec((1, tq, C), lambda b, qi, ki: (b, qi, 0))

    kernel = functools.partial(
        _epi_flash_kernel, heads=heads, head_dim=head_dim,
        sm_scale=1.0 / math.sqrt(head_dim),
        inv_rescale=1.0 / rescale_output_factor)

    flash_cost = pl.CostEstimate(
        flops=int(B * (4 * N * N * C + 2 * N * C * C)),
        transcendentals=int(B * heads * N * N),
        bytes_accessed=int((3 + 2 * nq) * B * N * C * itemsize   # q,res,out + kv stream
                           + C * (C + 1) * jnp.dtype(wo.dtype).itemsize))

    out = pl.pallas_call(
        kernel,
        out_shape=jax.ShapeDtypeStruct((B, N, C), dt),
        grid_spec=pltpu.PrefetchScalarGridSpec(
            num_scalar_prefetch=0,
            grid=(B, nq, nk),
            in_specs=[q_in, kv_in, kv_in, res_in, w_spec, b_spec],
            out_specs=out_spec,
            scratch_shapes=[
                pltpu.VMEM((tq, C), dt),                 # pre-scaled q tile
                pltpu.VMEM((tq, heads), jnp.float32),    # running row max / head
                pltpu.VMEM((tq, heads), jnp.float32),    # running row sum / head
                pltpu.VMEM((tq, C), jnp.float32),        # output accumulator
            ]),
        compiler_params=pltpu.CompilerParams(
            dimension_semantics=("parallel", "parallel", "arbitrary"),
            vmem_limit_bytes=vmem_limit),
        cost_estimate=flash_cost,
    )(q_full, k_full, v_full, hidden_states, wo, bo2)

    if return_aux:
        # query_origin / key_origin are exactly the projection-kernel outputs.
        return out, {"query": q_full, "key": k_full}
    return out, None


# --------------------------------------------------------------------------- #
# pure-JAX reference (mirrors the PyTorch module's default path, in f32)
# --------------------------------------------------------------------------- #
def _reference_forward(hs, params, heads, rescale=1.0):
    wq, wk, wv, wo, bo = params
    B, N, C = hs.shape
    hd = C // heads
    hs32 = hs.astype(jnp.float32)
    ehs = jnp.concatenate([hs32[B // 2:], hs32[:B // 2]], axis=0)
    q = hs32 @ wq.astype(jnp.float32)
    k = ehs @ wk.astype(jnp.float32)
    v = ehs @ wv.astype(jnp.float32)
    qh = q.reshape(B, N, heads, hd).transpose(0, 2, 1, 3)
    kh = k.reshape(B, N, heads, hd).transpose(0, 2, 1, 3)
    vh = v.reshape(B, N, heads, hd).transpose(0, 2, 1, 3)
    s = jnp.einsum("bhqd,bhkd->bhqk", qh, kh) / math.sqrt(hd)
    p = jax.nn.softmax(s, axis=-1)
    o = jnp.einsum("bhqk,bhkd->bhqd", p, vh)
    o = o.transpose(0, 2, 1, 3).reshape(B, N, C)
    o = o @ wo.astype(jnp.float32) + bo.astype(jnp.float32)
    o = (o + hs32) / rescale
    return o, q, k


if __name__ == "__main__":
    # batch, seq, hidden_size, heads (head_dim = 64). N=512 with the default
    # 256-wide tiles exercises both grid axes of both kernels (flash grid (2,2,2)).
    B, N, C, heads = 2, 512, 128, 2

    key = jax.random.PRNGKey(0)
    k_hs, k_q, k_k, k_v, k_o, k_b = jax.random.split(key, 6)
    std = 1.0 / math.sqrt(C)
    hidden_states = jax.random.normal(k_hs, (B, N, C), jnp.float32)
    wq = jax.random.normal(k_q, (C, C), jnp.float32) * std
    wk = jax.random.normal(k_k, (C, C), jnp.float32) * std
    wv = jax.random.normal(k_v, (C, C), jnp.float32) * std
    wo = jax.random.normal(k_o, (C, C), jnp.float32) * std
    bo = jax.random.normal(k_b, (C,), jnp.float32) * 0.01
    params = (wq, wk, wv, wo, bo)

    ref_out, ref_q, ref_k = _reference_forward(hidden_states, params, heads, 1.0)

    # f32 path (deltas vs reference: flash-softmax ordering + approx reciprocal)
    out, aux = epi_attn_processor(hidden_states, params, heads=heads,
                                  rescale_output_factor=1.0)
    jax.block_until_ready((out, aux))
    assert jnp.allclose(aux["query"], ref_q, atol=1e-2, rtol=1e-2), "query mismatch"
    assert jnp.allclose(aux["key"], ref_k, atol=1e-2, rtol=1e-2), "key mismatch"
    assert jnp.allclose(out, ref_out, atol=2e-2, rtol=2e-2), "output mismatch"

    # bf16 path: native-dtype MXU operands, f32 accumulation.
    hs_bf = hidden_states.astype(jnp.bfloat16)
    params_bf = tuple(p.astype(jnp.bfloat16) for p in params)
    out_bf, _ = epi_attn_processor(hs_bf, params_bf, heads=heads)
    jax.block_until_ready(out_bf)
    assert jnp.allclose(out_bf.astype(jnp.float32), ref_out, atol=2e-1, rtol=2e-1), \
        "bf16 output mismatch"

    # aux-free call and a v5e-style tiling (block_kv=128) both reuse the same kernels.
    out_noaux, _ = epi_attn_processor(hidden_states, params, heads=heads,
                                      block_q=128, block_kv=128, return_aux=False)
    jax.block_until_ready(out_noaux)
    assert jnp.allclose(out_noaux, ref_out, atol=2e-2, rtol=2e-2), "no-aux mismatch"

    print("KERNEL_OK")
</pallas_src>

<mosaic_0001>
module attributes {stable_mosaic.version = 11 : i64} {
  func.func @_qkv_proj_kernel(%arg0: i32, %arg1: i32, %arg2: memref<1x256x128xf32, #tpu.memory_space<vmem>>, %arg3: memref<128x128xf32, #tpu.memory_space<vmem>>, %arg4: memref<128x128xf32, #tpu.memory_space<vmem>>, %arg5: memref<128x128xf32, #tpu.memory_space<vmem>>, %arg6: memref<1x256x128xf32, #tpu.memory_space<vmem>>, %arg7: memref<1x256x128xf32, #tpu.memory_space<vmem>>, %arg8: memref<1x256x128xf32, #tpu.memory_space<vmem>>) attributes {dimension_semantics = [#tpu.dimension_semantics<parallel>, #tpu.dimension_semantics<parallel>], iteration_bounds = array<i64: 2, 2>, scalar_prefetch = 0 : i64, scratch_operands = 0 : i64, tpu.core_type = #tpu.core_type<tc>, window_params = [{transform_indices = @transform_0, window_bounds = array<i64: 1, 256, 128>}, {pipeline_mode = #tpu.pipeline_mode<synchronous>, transform_indices = @transform_1, window_bounds = array<i64: 128, 128>}, {pipeline_mode = #tpu.pipeline_mode<synchronous>, transform_indices = @transform_2, window_bounds = array<i64: 128, 128>}, {pipeline_mode = #tpu.pipeline_mode<synchronous>, transform_indices = @transform_3, window_bounds = array<i64: 128, 128>}, {transform_indices = @transform_4, window_bounds = array<i64: 1, 256, 128>}, {transform_indices = @transform_5, window_bounds = array<i64: 1, 256, 128>}, {transform_indices = @transform_6, window_bounds = array<i64: 1, 256, 128>}]} {
    %c0 = arith.constant 0 : index
    %c0_0 = arith.constant 0 : index
    %c0_1 = arith.constant 0 : index
    %0 = vector.load %arg2[%c0, %c0_0, %c0_1] : memref<1x256x128xf32, #tpu.memory_space<vmem>>, vector<1x256x128xf32>
    %1 = vector.shape_cast %0 : vector<1x256x128xf32> to vector<256x128xf32>
    %c0_2 = arith.constant 0 : index
    %c0_3 = arith.constant 0 : index
    %2 = vector.load %arg3[%c0_2, %c0_3] : memref<128x128xf32, #tpu.memory_space<vmem>>, vector<128x128xf32>
    %cst = arith.constant dense<0.000000e+00> : vector<256x128xf32>
    %3 = tpu.matmul %1, %2, %cst {dimension_numbers = #tpu.dot_dimension_numbers<[1], [0], [0], [1], [0, 0, 1, 1], [], []>} : vector<256x128xf32>, vector<128x128xf32>, vector<256x128xf32> -> vector<256x128xf32>
    %c0_4 = arith.constant 0 : index
    %c0_5 = arith.constant 0 : index
    %c0_6 = arith.constant 0 : index
    %4 = vector.load %arg6[%c0_4, %c0_5, %c0_6] : memref<1x256x128xf32, #tpu.memory_space<vmem>>, vector<1x256x128xf32>
    %5 = vector.shape_cast %4 : vector<1x256x128xf32> to vector<256x128xf32>
    %6 = vector.shape_cast %3 : vector<256x128xf32> to vector<1x256x128xf32>
    tpu.vector_store %arg6[%c0_4, %c0_5, %c0_6], %6 {strides = array<i32>} : memref<1x256x128xf32, #tpu.memory_space<vmem>>, vector<1x256x128xf32>,
    %c0_7 = arith.constant 0 : index
    %c0_8 = arith.constant 0 : index
    %7 = vector.load %arg4[%c0_7, %c0_8] : memref<128x128xf32, #tpu.memory_space<vmem>>, vector<128x128xf32>
    %cst_9 = arith.constant dense<0.000000e+00> : vector<256x128xf32>
    %8 = tpu.matmul %1, %7, %cst_9 {dimension_numbers = #tpu.dot_dimension_numbers<[1], [0], [0], [1], [0, 0, 1, 1], [], []>} : vector<256x128xf32>, vector<128x128xf32>, vector<256x128xf32> -> vector<256x128xf32>
    %c0_10 = arith.constant 0 : index
    %c0_11 = arith.constant 0 : index
    %c0_12 = arith.constant 0 : index
    %9 = vector.load %arg7[%c0_10, %c0_11, %c0_12] : memref<1x256x128xf32, #tpu.memory_space<vmem>>, vector<1x256x128xf32>
    %10 = vector.shape_cast %9 : vector<1x256x128xf32> to vector<256x128xf32>
    %11 = vector.shape_cast %8 : vector<256x128xf32> to vector<1x256x128xf32>
    tpu.vector_store %arg7[%c0_10, %c0_11, %c0_12], %11 {strides = array<i32>} : memref<1x256x128xf32, #tpu.memory_space<vmem>>, vector<1x256x128xf32>,
    %c0_13 = arith.constant 0 : index
    %c0_14 = arith.constant 0 : index
    %12 = vector.load %arg5[%c0_13, %c0_14] : memref<128x128xf32, #tpu.memory_space<vmem>>, vector<128x128xf32>
    %cst_15 = arith.constant dense<0.000000e+00> : vector<256x128xf32>
    %13 = tpu.matmul %1, %12, %cst_15 {dimension_numbers = #tpu.dot_dimension_numbers<[1], [0], [0], [1], [0, 0, 1, 1], [], []>} : vector<256x128xf32>, vector<128x128xf32>, vector<256x128xf32> -> vector<256x128xf32>
    %c0_16 = arith.constant 0 : index
    %c0_17 = arith.constant 0 : index
    %c0_18 = arith.constant 0 : index
    %14 = vector.load %arg8[%c0_16, %c0_17, %c0_18] : memref<1x256x128xf32, #tpu.memory_space<vmem>>, vector<1x256x128xf32>
    %15 = vector.shape_cast %14 : vector<1x256x128xf32> to vector<256x128xf32>
    %16 = vector.shape_cast %13 : vector<256x128xf32> to vector<1x256x128xf32>
    tpu.vector_store %arg8[%c0_16, %c0_17, %c0_18], %16 {strides = array<i32>} : memref<1x256x128xf32, #tpu.memory_space<vmem>>, vector<1x256x128xf32>,
    return
  }
  func.func @transform_0(%arg0: i32, %arg1: i32) -> (i32, i32, i32) {
    %c0_i32 = arith.constant 0 : i32
    %c0_i32_0 = arith.constant 0 : i32
    return %arg0, %arg1, %c0_i32 : i32, i32, i32
  }
  func.func @transform_1(%arg0: i32, %arg1: i32) -> (i32, i32) {
    %c0_i32 = arith.constant 0 : i32
    %c0_i32_0 = arith.constant 0 : i32
    %c0_i32_1 = arith.constant 0 : i32
    return %c0_i32, %c0_i32_0 : i32, i32
  }
  func.func @transform_2(%arg0: i32, %arg1: i32) -> (i32, i32) {
    %c0_i32 = arith.constant 0 : i32
    %c0_i32_0 = arith.constant 0 : i32
    %c0_i32_1 = arith.constant 0 : i32
    return %c0_i32, %c0_i32_0 : i32, i32
  }
  func.func @transform_3(%arg0: i32, %arg1: i32) -> (i32, i32) {
    %c0_i32 = arith.constant 0 : i32
    %c0_i32_0 = arith.constant 0 : i32
    %c0_i32_1 = arith.constant 0 : i32
    return %c0_i32, %c0_i32_0 : i32, i32
  }
  func.func @transform_4(%arg0: i32, %arg1: i32) -> (i32, i32, i32) {
    %c0_i32 = arith.constant 0 : i32
    %c0_i32_0 = arith.constant 0 : i32
    return %arg0, %arg1, %c0_i32 : i32, i32, i32
  }
  func.func @transform_5(%arg0: i32, %arg1: i32) -> (i32, i32, i32) {
    %c1_i32 = arith.constant 1 : i32
    %0 = arith.addi %arg0, %c1_i32 : i32
    %c2_i32 = arith.constant 2 : i32
    %c0_i32 = arith.constant 0 : i32
    %1 = arith.cmpi eq, %c2_i32, %c0_i32 : i32
    %c1_i32_0 = arith.constant 1 : i32
    %2 = arith.select %1, %c1_i32_0, %c2_i32 : i32
    %3 = arith.remsi %0, %2 : i32
    %c0_i32_1 = arith.constant 0 : i32
    %4 = arith.cmpi ne, %3, %c0_i32_1 : i32
    %c0_i32_2 = arith.constant 0 : i32
    %5 = arith.cmpi slt, %3, %c0_i32_2 : i32
    %c0_i32_3 = arith.constant 0 : i32
    %6 = arith.cmpi slt, %2, %c0_i32_3 : i32
    %7 = arith.xori %5, %6 : i1
    %8 = arith.andi %7, %4 : i1
    %9 = arith.addi %3, %2 : i32
    %10 = arith.select %8, %9, %3 : i32
    %c0_i32_4 = arith.constant 0 : i32
    %c0_i32_5 = arith.constant 0 : i32
    return %10, %arg1, %c0_i32_4 : i32, i32, i32
  }
  func.func @transform_6(%arg0: i32, %arg1: i32) -> (i32, i32, i32) {
    %c1_i32 = arith.constant 1 : i32
    %0 = arith.addi %arg0, %c1_i32 : i32
    %c2_i32 = arith.constant 2 : i32
    %c0_i32 = arith.constant 0 : i32
    %1 = arith.cmpi eq, %c2_i32, %c0_i32 : i32
    %c1_i32_0 = arith.constant 1 : i32
    %2 = arith.select %1, %c1_i32_0, %c2_i32 : i32
    %3 = arith.remsi %0, %2 : i32
    %c0_i32_1 = arith.constant 0 : i32
    %4 = arith.cmpi ne, %3, %c0_i32_1 : i32
    %c0_i32_2 = arith.constant 0 : i32
    %5 = arith.cmpi slt, %3, %c0_i32_2 : i32
    %c0_i32_3 = arith.constant 0 : i32
    %6 = arith.cmpi slt, %2, %c0_i32_3 : i32
    %7 = arith.xori %5, %6 : i1
    %8 = arith.andi %7, %4 : i1
    %9 = arith.addi %3, %2 : i32
    %10 = arith.select %8, %9, %3 : i32
    %c0_i32_4 = arith.constant 0 : i32
    %c0_i32_5 = arith.constant 0 : i32
    return %10, %arg1, %c0_i32_4 : i32, i32, i32
  }
}

</mosaic_0001>

<bundles_post_ra>
// kernel: tpu_custom_call.1
= control target key start
LH: loop header
LB: loop body
LE: loop exit
PB: predicated region body
PF: predicated region fallthrough
CT: control target
= control target key end

     0   :  { %s3179_s0 = inlined_call_operand.hbm [shape: f32[2,512,128], index: 0, kind: input, shape index: {}]   ;;  %s3180_s1 = inlined_call_operand.hbm [shape: f32[128,128], index: 1, kind: input, shape index: {}]   ;;  %s3181_s2 = inlined_call_operand.hbm [shape: f32[128,128], index: 2, kind: input, shape index: {}]   ;;  %s3182_s3 = inlined_call_operand.hbm [shape: f32[128,128], index: 3, kind: input, shape index: {}]   ;;  %s3183_s4 = inlined_call_operand.hbm [shape: f32[2,512,128], index: 4, kind: output, shape index: {0}]   ;;  %s3184_s5 = inlined_call_operand.hbm [shape: f32[2,512,128], index: 5, kind: output, shape index: {1}]   ;;  %s3185_s6 = inlined_call_operand.hbm [shape: f32[2,512,128], index: 6, kind: output, shape index: {2}]  }
   0x1   :  { %3206 = sst [smem:[#allocation30_spill]] %s3180_s1 }
   0x2   :  { %3207 = sst [smem:[#allocation31_spill]] %s3181_s2 }
   0x3   :  { %3208 = sst [smem:[#allocation32_spill]] %s3182_s3 }
   0x4   :  { %3209 = sst [smem:[#allocation33_spill]] %s3183_s4 }
   0x5   :  { %3210 = sst [smem:[#allocation34_spill]] %s3184_s5 }
   0x6   :  { %3211 = sst [smem:[#allocation35_spill]] %s3185_s6 }
   0x7   :  { %12 = vsyncpa [#allocation3], 0 }
   0x8   :  { %14 = vsyncpa [#allocation3 + $0x1], 0 }
   0x9   :  { %15 = vsyncpa [#allocation6], 0 }
   0xa   :  { %16 = vsyncpa [#allocation9], 0 }
   0xb   :  { %17 = vsyncpa [#allocation4], 0 }
   0xc   :  { %19 = vsyncpa [#allocation4 + $0x1], 0 }
   0xd   :  { %20 = vsyncpa [#allocation12], 0 }
   0xe   :  { %22 = vsyncpa [#allocation12 + $0x1], 0  ;;  %s2513_s21 = smov 0   ;;  %s2515_s22 = smov 0  }
   0xf   :  { %s2517_s23 = smov 0   ;;  %s2519_s24 = smov 0  }
  0x10   :  { %s2521_s25 = smov 0   ;;  %s2523_s26 = smov 0  }
  0x11   :  { %s2525_s27 = smov 0   ;;  %s2527_s28 = smov 0  }
  0x12   :  { %s2529_s29 = smov 0   ;;  %s2531_s30 = smov 0  }
  0x13   :  { %s2533_s7 = smov 0  }
  0x14 LB: > { %3212 = sst [smem:[#allocation19_spill]] %s2429_s22  ;;  %s2567_s8 = sadd.s32 4294967295, %s2465_s7   ;;  %s2465_s7 = sphi %s2533_s7, %s28_s7   ;;  %s2461_s30 = sphi %s2531_s30, %s3267_s30   ;;  %s2457_s29 = sphi %s2529_s29, %s3260_s29   ;;  %s2453_s28 = sphi %s2527_s28, %s3259_s28   ;;  %s2449_s27 = sphi %s2525_s27, %s3258_s27   ;;  %s2445_s26 = sphi %s2523_s26, %s3266_s26   ;;  %s2441_s25 = sphi %s2521_s25, %s3265_s25   ;;  %s2437_s24 = sphi %s2519_s24, %s3264_s24   ;;  %s2433_s23 = sphi %s2517_s23, %s3263_s23   ;;  %s2429_s22 = sphi %s2515_s22, %s3262_s22   ;;  %s2425_s21 = sphi %s2513_s21, %s3256_s21  }
  0x15   : > { %3213 = sst [smem:[#allocation20_spill]] %s2437_s24  ;;  %s3186_s9 = sadd.s32 4294967294, %s2465_s7  }
  0x16   : > { %3214 = sst [smem:[#allocation21_spill]] %s2457_s29  ;;  %p62_p0 = scmp.ne.s32.totalorder %s2441_s25, %s2437_s24 }
  0x17   : > { %3215 = sst [smem:[#allocation22_spill]] %s2461_s30  ;;  %p3187_p1 = scmp.eq.s32.totalorder %s2567_s8, 0 }
  0x18   : > { %p3188_p2 = scmp.eq.s32.totalorder %s2567_s8, 3  ;;  %p157_p3 = scmp.eq.s32.totalorder %s3186_s9, 3 }
  0x19   : > { %p2578_p4 = por %p3187_p1, %p62_p0  ;;  %p204_p5 = scmp.ne.s32.totalorder %s2433_s23, %s2429_s22 }
  0x1a   : > { %p2584_p6 = por %p157_p3, %p62_p0  ;;  %p210_p7 = scmp.ne.s32.totalorder %s2429_s22, %s2425_s21 }
  0x1b   : > { %p2591_p8 = por %p204_p5, %p3188_p2  ;;  %p1575_p9 = scmp.ge.s32.totalorder %s2465_s7, 1 }
  0x1c   : > { %s3217_s11 = scalar_select %p2584_p6, 1, 0 }
  0x1d   : > { %s3219_s12 = scalar_select %p2591_p8, 1, 0 }
  0x1e   : > { %3218 = sst [smem:[#allocation23_spill]] %s3217_s11  ;;  %p2596_p10 = por %p210_p7, %p157_p3 }
  0x1f   : > { %3220 = sst [smem:[#allocation24_spill]] %s3219_s12  ;;  %p272_p11 = scmp.lt.s32.totalorder %s2465_s7, 5 }
  0x20   : > { %s3221_s13 = scalar_select %p2596_p10, 1, 0 }
  0x21   : > { %p2601_p12 = pnand %p1575_p9, %p272_p11  ;;  %s2467_s15 = smov [#allocation5]  }
  0x22   : > { %3222 = sst [smem:[#allocation25_spill]] %s3221_s13  ;;  %s284_s16 = sshll.u32 %s2467_s15, 4  ;;  %s285_s16 = int_to_ptr.vmem [resolvable:$true] %s284_s16 }
  0x23   : > { %p2048_p13 = pneg %p2601_p12  ;;  %s2468_s18 = smov [#allocation7]  }
  0x24   : > { %s297_s19 = sshll.u32 %s2468_s18, 4  ;;  %s2469_s20 = smov [#allocation8]   ;;  %s298_s19 = int_to_ptr.vmem [resolvable:$true] %s297_s19 }
  0x25   : > { %p2609_p0 = pnand %p2048_p13, %p3187_p1  ;;  %s310_s21 = sshll.u32 %s2469_s20, 4  ;;  %s311_s21 = int_to_ptr.vmem [resolvable:$true] %s310_s21 }
  0x26   : > { %s2186_s9 = scalar_lea.vmem %s285_s16, 2048  ;;  %p2194_p11 = scmp.lt.s32.totalorder %s285_s16, %s285_s16 }
  0x27   : > { %p2177_p3 = pneg %p2609_p0  ;;  %p2187_p5 = scmp.ne.s32.totalorder %s285_s16, %s2186_s9 }
  0x28   : > { %p2195_p13 = scmp.lt.s32.totalorder %s2186_s9, %s2186_s9 }
  0x29   : > { %p2189_p7 = pnand %p2187_p5, %p2177_p3 }
  0x2a   : > { %p2196_p1 = por %p2195_p13, %p2194_p11 }
  0x2b   : > { %p2190_p9 = pneg %p2189_p7 }
  0x2d   : > { %p2197_p2 = pnand %p2196_p1, %p2190_p9 }
  0x2f   : > { %2200 = shalt.err (!%p2197_p2)
}
  0x30   : > { %s3192_s15 = smov 128   ;;  %s3193_s18 = smov 8  }
  0x31   : > { %s3225_s1 = sld [smem:[#allocation30_spill]]  ;;  %s2212_s11 = scalar_lea.vmem %s298_s19, 2048 }
  0x32   : > { %p2213_p5 = scmp.ne.s32.totalorder %s298_s19, %s2212_s11  ;;  %p2220_p1 = scmp.lt.s32.totalorder %s298_s19, %s298_s19 }
  0x33   : > { %p2221_p2 = scmp.lt.s32.totalorder %s2212_s11, %s2212_s11 }
  0x34   : > { %p2215_p7 = pnand %p2213_p5, %p2177_p3 }
  0x35   : > { %p2222_p9 = por %p2221_p2, %p2220_p1 }
  0x36   : > { %p2216_p11 = pneg %p2215_p7 }
  0x37   : > { %2051 = dma.hbm_to_vmem [thread:$0]  (!%p2609_p0), %s3225_s1, 2048, %s285_s16, [#allocation6], %s3192_s15, %s3192_s15, %s3193_s18  }
  0x38   : > { %p2223_p13 = pnand %p2222_p9, %p2216_p11 }
  0x3a   : > { %2226 = shalt.err (!%p2223_p13)
}
  0x3b   : > { %s3226_s2 = sld [smem:[#allocation31_spill]]  ;;  %s2238_s13 = scalar_lea.vmem %s311_s21, 2048 }
  0x3c   : > { %p2239_p10 = scmp.ne.s32.totalorder %s311_s21, %s2238_s13  ;;  %p2246_p1 = scmp.lt.s32.totalorder %s311_s21, %s311_s21 }
  0x3d   : > { %p2247_p11 = scmp.lt.s32.totalorder %s2238_s13, %s2238_s13 }
  0x3e   : > { %p2241_p5 = pnand %p2239_p10, %p2177_p3 }
  0x3f   : > { %p2248_p2 = por %p2247_p11, %p2246_p1 }
  0x40   : > { %p2242_p7 = pneg %p2241_p5 }
  0x41   : > { %2054 = dma.hbm_to_vmem [thread:$0]  (!%p2609_p0), %s3226_s2, 2048, %s298_s19, [#allocation6], %s3192_s15, %s3192_s15, %s3193_s18  }
  0x42   : > { %p2249_p9 = pnand %p2248_p2, %p2242_p7 }
  0x44   : > { %2252 = shalt.err (!%p2249_p9)
}
  0x45   : > { %s3227_s3 = sld [smem:[#allocation32_spill]]  ;;  %s37_s16 = sadd.s32 1, %s2457_s29 }
  0x46   : > { %p38_p10 = scmp.ge.s32.totalorder %s37_s16, 2  ;;  %s40_s17 = sadd.s32 1, %s2461_s30 }
  0x47   : > { %p56_p3 = scmp.ne.s32.totalorder %s2445_s26, %s2441_s25  ;;  %s49_s20 = sadd.s32 1, %s2445_s26 }
  0x48   : > { %s3269_s16 = smov (%p38_p10, %s37_s16), 0  ;;  %p3229_p5 = scmp.eq.s32.totalorder %s2567_s8, 3 }
  0x49   : > { %3228 = sst [smem:[#allocation26_spill]] %s3269_s16  ;;  %s165_s13 = ssub.s32 0, %s40_s17 }
  0x4a   : > { %s41_s19 = scalar_select %p38_p10, %s40_s17, %s2461_s30 }
  0x4b   : > { %2057 = dma.hbm_to_vmem [thread:$0]  (!%p2609_p0), %s3227_s3, 2048, %s311_s21, [#allocation9], %s3192_s15, %s3192_s15, %s3193_s18  }
  0x4c   : > { %p42_p13 = scmp.ge.s32.totalorder %s41_s19, 2  ;;  %p2661_p7 = por %p3229_p5, %p56_p3 }
  0x4d   : > { %s2667_s21 = ssub.s32 %s2457_s29, %s3269_s16  ;;  %p57_p0 = scmp.eq.s32.totalorder %s2465_s7, 0 }
  0x4e   : > { %s3230_s9 = scalar_select %p2661_p7, 1, 0 }
  0x4f   : > { %s3271_s19 = smov (%p42_p13, %s41_s19), 0  ;;  %s1563_s11 = smin.u32 %s165_s13, %s40_s17 }
  0x50   : > { %3231 = sst [smem:[#allocation27_spill]] %s3230_s9  ;;  %s44_s24 = ssub.s32 %s2461_s30, %s3271_s19 }
  0x51   : > { %3232 = sst [smem:[#allocation28_spill]] %s3271_s19  ;;  %s46_s15 = sor.u32 %s2667_s21, %s44_s24 }
  0x52   : > { %s167_s18 = sand.u32 1, %s1563_s11   ;;  %p47_p1 = scmp.eq.s32.totalorder %s46_s15, 0 }
  0x53   : > { %p1565_p11 = scmp.lt.s32.totalorder %s167_s18, 0  ;;  %s174_s2 = sadd.s32 2, %s167_s18 }
  0x54   : > { %s2676_s1 = scalar_select %p47_p1, %s2445_s26, %s49_s20  }
  0x55   : > { %p2681_p2 = por %p57_p0, %p56_p3  ;;  %s176_s16 = sadd.s32 1, %s3271_s19 }
  0x56   : > { %3233 = sst [smem:[#allocation29_spill]] %s2676_s1  ;;  %s3273_s2 = smov (!%p1565_p11, %s174_s2), %s167_s18 }
  0x57   : > { %s178_s6 = ssub.s32 0, %s176_s16  ;;  %s324_s17 = sand.u32 1, %s2445_s26  }
  0x58   : > { %s1566_s5 = smin.u32 %s178_s6, %s176_s16  ;;  %s194_s15 = sadd.s32 1, %s2433_s23 }
  0x59   : > { %s180_s13 = sand.u32 1, %s1566_s5   ;;  %s1580_s24 = sshll.u32 %s324_s17, 8 }
  0x5a   : > { %s1581_s20 = sshll.u32 %s2457_s29, 5  ;;  %p1568_p9 = scmp.lt.s32.totalorder %s180_s13, 0 }
  0x5b   : > { %s187_s11 = sadd.s32 2, %s180_s13  ;;  %p2075_p10 = scmp.lt.s32.totalorder %s2465_s7, 4 }
  0x5c   : > { %s1582_s1 = sshll.u32 %s2461_s30, 6  ;;  %s3275_s11 = smov (!%p1568_p9, %s187_s11), %s180_s13 }
  0x5d   : > { %s334_s12 = sadd.s32 %s1582_s1, %s1581_s20  ;;  %s328_s4 = scalar_lea.vmem [#allocation2], %s1580_s24 }
  0x5e   : > { %s337_s9 = sshll.u32 %s328_s4, 4  ;;  %s189_s19 = ssub.s32 %s3273_s2, %s3275_s11  ;;  %s338_s9 = int_to_ptr.vmem [resolvable:$true] %s337_s9 }
  0x5f   : > { %s1583_s18 = sshll.u32 %s334_s12, 7  ;;  %s191_s22 = sor.u32 %s189_s19, %s2667_s21 }
  0x60   : > { %p192_p3 = scmp.eq.s32.totalorder %s191_s22, 0  ;;  %p2694_p13 = pnand %p2075_p10, %p2681_p2 }
  0x61   : > { %s336_s29 = scalar_lea.hbm %s3179_s0, %s1583_s18  ;;  %s325_s1 = scalar_lea.sflag [#allocation3], %s324_s17 }
  0x62   : > { %s2702_s30 = scalar_select %p192_p3, %s2433_s23, %s194_s15  }
  0x63   : > { %p2255_p5 = pneg %p2694_p13  ;;  %s2266_s2 = scalar_lea.vmem %s338_s9, 4096 }
  0x64   : > { %p2267_p0 = scmp.ne.s32.totalorder %s338_s9, %s2266_s2  ;;  %s2472_s3 = smov [#allocation2]  }
  0x65   : > { %s2271_s4 = sshll.u32 %s2472_s3, 4  ;;  %s2272_s4 = int_to_ptr.vmem [resolvable:$false] %s2271_s4 }
  0x66   : > { %p2269_p1 = pnand %p2267_p0, %p2255_p5  ;;  %s2273_s22 = scalar_lea.vmem %s2272_s4, 8192 }
  0x67   : > { %p2274_p2 = scmp.lt.s32.totalorder %s338_s9, %s2272_s4  ;;  %p2275_p9 = scmp.lt.s32.totalorder %s2273_s22, %s2266_s2 }
  0x68   : > { %p2270_p11 = pneg %p2269_p1 }
  0x69   : > { %p2276_p10 = por %p2275_p9, %p2274_p2 }
  0x6b   : > { %p2277_p6 = pnand %p2276_p10, %p2270_p11 }
  0x6d   : > { %2280 = shalt.err (!%p2277_p6)
}
  0x6e   : > { %s3236_s12 = smov 8   ;;  %s3237_s19 = smov 128  }
  0x6f   : > { %2061 = dma.hbm_to_vmem [thread:$0]  (!%p2694_p13), %s336_s29, 4096, %s338_s9, %s325_s1, %s3237_s19, %s3237_s19, %s3236_s12  }
  0x70   : > { %349 = sbr.rel (%p2601_p12) target bundleno = 504 (0x1f8), region = 36  ;;  %s2714_s21 = sand.u32 (!%p2601_p12), 1, %s2441_s25  }
  0x71   : > { %s1585_s17 = sshll.u32 (!%p2601_p12), %s2714_s21, 8  ;;  %s352_s13 = scalar_lea.sflag (!%p2601_p12), [#allocation3], %s2714_s21 }
  0x72   : > { %s2720_s15 = scalar_lea.vmem (!%p2601_p12), [#allocation2], %s1585_s17 }
  0x75   : > { %2404 = dma.done.wait (%p2578_p4), %s352_s13, 4096  }
  0x76   : > { %2406 = vsyncadd (%p2578_p4), %s352_s13, 4294963200  ;;  %p3238_p6 = scmp.eq.s32.totalorder %s2567_s8, 0 }
  0x78   : > { %2408 = dma.done.wait (%p3238_p6), [#allocation6], 4096   ;;  %p3239_p12 = pmov %p3238_p6 }
  0x79   : > { %p3240_p3 = pmov %p3238_p6 }
  0x7a   : > { %2410 = vsyncadd (%p3239_p12), [#allocation6], 4294963200 }
  0x7b   : > { %2412 = dma.done.wait (%p3240_p3), [#allocation9], 2048   ;;  %p3241_p13 = pmov %p3240_p3 }
  0x7c   : > { %v483_v0 = vld [vmem:[#allocation5 + $0x78] sm:$0xff]  ;;  %v482_v1 = vld [vmem:[#allocation5 + $0x70] sm:$0xff]  ;;  %v481_v2 = vld [vmem:[#allocation5 + $0x68] sm:$0xff]  ;;  %s2918_s29 = scalar_lea.vmem [#allocation10], %s1585_s17  ;;  %s3242_s10 = sld [smem:[#allocation19_spill]] }
  0x7d   : > { %2414 = vsyncadd (%p3241_p13), [#allocation9], 4294965248  ;;  %1756 = vmatprep.subr.mxu0 %v483_v0  ;;  %1996 = vmatprep.subr.mxu1 %v483_v0  ;;  %v480_v3 = vld [vmem:[#allocation5 + $0x60] sm:$0xff]  ;;  %v479_v4 = vld [vmem:[#allocation5 + $0x58] sm:$0xff]  ;;  %s1595_s14 = sshll.u32 %s2449_s27, 5  ;;  %s1596_s9 = sshll.u32 %s2453_s28, 6 }
  0x7e   : > { %1757 = vmatpush3.msra.mxu0 %v483_v0  ;;  %2012 = vmatpush3.msra.mxu1 %v483_v0  ;;  %v478_v5 = vld [vmem:[#allocation5 + $0x50] sm:$0xff]  ;;  %v477_v6 = vld [vmem:[#allocation5 + $0x48] sm:$0xff]  ;;  %v476_v7 = vld [vmem:[#allocation5 + $0x40] sm:$0xff]  ;;  %s1310_s24 = sadd.s32 %s1596_s9, %s1595_s14  ;;  %s1313_s5 = sshll.u32 %s2918_s29, 4  ;;  %s2963_s5 = int_to_ptr.vmem [resolvable:$true] %s1313_s5 }
  0x7f   : > { %1758 = vmatprep.subr.mxu0 %v482_v1  ;;  %1997 = vmatprep.subr.mxu1 %v482_v1  ;;  %v475_v8 = vld [vmem:[#allocation5 + $0x38] sm:$0xff]  ;;  %v474_v9 = vld [vmem:[#allocation5 + $0x30] sm:$0xff]  ;;  %v473_v10 = vld [vmem:[#allocation5 + $0x28] sm:$0xff]  ;;  %s1597_s11 = sshll.u32 %s1310_s24, 7  ;;  %s3244_s2 = sld [smem:[#allocation33_spill]] }
  0x80   : > { %1759 = vmatpush3.msra.mxu0 %v482_v1  ;;  %2013 = vmatpush3.msra.mxu1 %v482_v1  ;;  %v472_v11 = vld [vmem:[#allocation5 + $0x20] sm:$0xff]  ;;  %v471_v12 = vld [vmem:[#allocation5 + $0x18] sm:$0xff]  ;;  %v470_v13 = vld [vmem:[#allocation5 + $0x10] sm:$0xff]  ;;  %s1288_s4 = scalar_lea.sflag [#allocation4], %s2714_s21  ;;  %s2281_s22 = scalar_lea.vmem %s2963_s5, 4096 }
  0x81   : > { %1760 = vmatprep.subr.mxu0 %v481_v2  ;;  %1998 = vmatprep.subr.mxu1 %v481_v2  ;;  %v469_v14 = vld [vmem:[#allocation5 + $0x8] sm:$0xff]  ;;  %v468_v15 = vld [vmem:[#allocation5] sm:$0xff]  ;;  %v756_v20 = vld [vmem:[#allocation7 + $0x78] sm:$0xff]  ;;  %p2282_p4 = scmp.ne.s32.totalorder %s2963_s5, %s2281_s22  ;;  %s2473_s12 = smov [#allocation10]  }
  0x82   : > { %1761 = vmatpush3.msra.mxu0 %v481_v2  ;;  %2014 = vmatpush3.msra.mxu1 %v481_v2  ;;  %v2735_v16 = vld [vmem:[%s2720_s15] sm:$0xff]  ;;  %v2741_v18 = vld [vmem:[%s2720_s15 + $0x8] sm:$0xff]  ;;  %v1029_v21 = vld [vmem:[#allocation8 + $0x78] sm:$0xff]  ;;  %s396_s20 = sand.u32 1, %s3242_s10   ;;  %s2285_s19 = sshll.u32 %s2473_s12, 4  ;;  %s2286_s19 = int_to_ptr.vmem [resolvable:$false] %s2285_s19 }
  0x83   : > { %1762 = vmatprep.subr.mxu0 %v480_v3  ;;  %1999 = vmatprep.subr.mxu1 %v480_v3  ;;  %v2738_v17 = vld [vmem:[%s2720_s15 + $0x80] sm:$0xff]  ;;  %v2744_v19 = vld [vmem:[%s2720_s15 + $0x88] sm:$0xff]  ;;  %v755_v22 = vld [vmem:[#allocation7 + $0x70] sm:$0xff]  ;;  %s2954_s6 = sshll.u32 %s396_s20, 8  ;;  %p2283_p5 = pnand %p2282_p4, %p2661_p7 }
  0x84   : > { %1763 = vmatpush3.msra.mxu0 %v480_v3  ;;  %2015 = vmatpush3.msra.mxu1 %v480_v3  ;;  %v1028_v23 = vld [vmem:[#allocation8 + $0x70] sm:$0xff]  ;;  %v2757_v26 = vld [vmem:[%s2720_s15 + $0x18] sm:$0xff]  ;;  %v754_v28 = vld [vmem:[#allocation7 + $0x68] sm:$0xff]  ;;  %s2287_s17 = scalar_lea.vmem %s2286_s19, 8192  ;;  %p2288_p1 = scmp.lt.s32.totalorder %s2963_s5, %s2286_s19 }
  0x85   : > { %1764 = vmatprep.subr.mxu0 %v479_v4  ;;  %2000 = vmatprep.subr.mxu1 %v479_v4  ;;  %v2751_v24 = vld [vmem:[%s2720_s15 + $0x10] sm:$0xff]  ;;  %v2760_v27 = vld [vmem:[%s2720_s15 + $0x98] sm:$0xff]  ;;  %v1027_v29 = vld [vmem:[#allocation8 + $0x68] sm:$0xff]  ;;  %s2961_s3 = scalar_lea.hbm %s3244_s2, %s1597_s11  ;;  %p2284_p0 = pneg %p2283_p5 }
  0x86   : > { %1765 = vmatpush3.msra.mxu0 %v479_v4  ;;  %2016 = vmatpush3.msra.mxu1 %v479_v4  ;;  %v2754_v25 = vld [vmem:[%s2720_s15 + $0x90] sm:$0xff]  ;;  %v753_v30 = vld [vmem:[#allocation7 + $0x60] sm:$0xff]  ;;  %v2773_v34 = vld [vmem:[%s2720_s15 + $0x28] sm:$0xff]  ;;  %p2289_p11 = scmp.lt.s32.totalorder %s2287_s17, %s2281_s22 }
  0x87   : > { %1766 = vmatprep.subr.mxu0 %v478_v5  ;;  %2001 = vmatprep.subr.mxu1 %v478_v5  ;;  %v1026_v31 = vld [vmem:[#allocation8 + $0x60] sm:$0xff]  ;;  %v2776_v35 = vld [vmem:[%s2720_s15 + $0xa8] sm:$0xff]  ;;  %v752_v36 = vld [vmem:[#allocation7 + $0x58] sm:$0xff] }
  0x88   : > { %1767 = vmatpush3.msra.mxu0 %v478_v5  ;;  %2017 = vmatpush3.msra.mxu1 %v478_v5  ;;  %v2767_v32 = vld [vmem:[%s2720_s15 + $0x20] sm:$0xff]  ;;  %v1025_v37 = vld [vmem:[#allocation8 + $0x58] sm:$0xff]  ;;  %v751_v38 = vld [vmem:[#allocation7 + $0x50] sm:$0xff]  ;;  %p2290_p2 = por %p2289_p11, %p2288_p1 }
  0x89   : > { %1768 = vmatprep.subr.mxu0 %v477_v6  ;;  %2002 = vmatprep.subr.mxu1 %v477_v6  ;;  %v2770_v33 = vld [vmem:[%s2720_s15 + $0xa0] sm:$0xff]  ;;  %v1024_v39 = vld [vmem:[#allocation8 + $0x50] sm:$0xff]  ;;  %v2789_v42 = vld [vmem:[%s2720_s15 + $0x38] sm:$0xff] }
  0x8a   : > { %1769 = vmatpush3.msra.mxu0 %v477_v6  ;;  %2018 = vmatpush3.msra.mxu1 %v477_v6  ;;  %v2783_v40 = vld [vmem:[%s2720_s15 + $0x30] sm:$0xff]  ;;  %v2792_v43 = vld [vmem:[%s2720_s15 + $0xb8] sm:$0xff]  ;;  %v750_v44 = vld [vmem:[#allocation7 + $0x48] sm:$0xff]  ;;  %p2291_p9 = pnand %p2290_p2, %p2284_p0 }
  0x8b   : > { %1770 = vmatprep.subr.mxu0 %v476_v7  ;;  %2003 = vmatprep.subr.mxu1 %v476_v7  ;;  %v2786_v41 = vld [vmem:[%s2720_s15 + $0xb0] sm:$0xff]  ;;  %v1023_v45 = vld [vmem:[#allocation8 + $0x48] sm:$0xff]  ;;  %v749_v46 = vld [vmem:[#allocation7 + $0x40] sm:$0xff] }
  0x8c   : > { %1771 = vmatpush3.msra.mxu0 %v476_v7  ;;  %2019 = vmatpush3.msra.mxu1 %v476_v7  ;;  %v1022_v47 = vld [vmem:[#allocation8 + $0x40] sm:$0xff]  ;;  %v2805_v50 = vld [vmem:[%s2720_s15 + $0x48] sm:$0xff]  ;;  %v748_v52 = vld [vmem:[#allocation7 + $0x38] sm:$0xff] }
  0x8d   : > { %1772 = vmatprep.subr.mxu0 %v475_v8  ;;  %2004 = vmatprep.subr.mxu1 %v475_v8  ;;  %v2799_v48 = vld [vmem:[%s2720_s15 + $0x40] sm:$0xff]  ;;  %v2808_v51 = vld [vmem:[%s2720_s15 + $0xc8] sm:$0xff]  ;;  %v1021_v53 = vld [vmem:[#allocation8 + $0x38] sm:$0xff] }
  0x8e   : > { %1773 = vmatpush3.msra.mxu0 %v475_v8  ;;  %2020 = vmatpush3.msra.mxu1 %v475_v8  ;;  %v2802_v49 = vld [vmem:[%s2720_s15 + $0xc0] sm:$0xff]  ;;  %v747_v54 = vld [vmem:[#allocation7 + $0x30] sm:$0xff]  ;;  %v2821_v58 = vld [vmem:[%s2720_s15 + $0x58] sm:$0xff] }
  0x8f   : > { %1774 = vmatprep.subr.mxu0 %v474_v9  ;;  %2005 = vmatprep.subr.mxu1 %v474_v9  ;;  %v1020_v55 = vld [vmem:[#allocation8 + $0x30] sm:$0xff]  ;;  %v2824_v59 = vld [vmem:[%s2720_s15 + $0xd8] sm:$0xff]  ;;  %v746_v60 = vld [vmem:[#allocation7 + $0x28] sm:$0xff] }
  0x90   : > { %1775 = vmatpush3.msra.mxu0 %v474_v9  ;;  %2021 = vmatpush3.msra.mxu1 %v474_v9  ;;  %v2815_v56 = vld [vmem:[%s2720_s15 + $0x50] sm:$0xff]  ;;  %v1019_v61 = vld [vmem:[#allocation8 + $0x28] sm:$0xff]  ;;  %v745_v62 = vld [vmem:[#allocation7 + $0x20] sm:$0xff] }
  0x91   : > { %1776 = vmatprep.subr.mxu0 %v473_v10  ;;  %2006 = vmatprep.subr.mxu1 %v473_v10  ;;  %v2818_v57 = vld [vmem:[%s2720_s15 + $0xd0] sm:$0xff]  ;;  %v1018_v63 = vld [vmem:[#allocation8 + $0x20] sm:$0xff]  ;;  %v2837_v2 = vld [vmem:[%s2720_s15 + $0x68] sm:$0xff] }
  0x92   : > { %1777 = vmatpush3.msra.mxu0 %v473_v10  ;;  %2022 = vmatpush3.msra.mxu1 %v473_v10  ;;  %v2831_v0 = vld [vmem:[%s2720_s15 + $0x60] sm:$0xff]  ;;  %v2840_v3 = vld [vmem:[%s2720_s15 + $0xe8] sm:$0xff]  ;;  %v744_v4 = vld [vmem:[#allocation7 + $0x18] sm:$0xff] }
  0x93   : > { %1778 = vmatprep.subr.mxu0 %v472_v11  ;;  %2007 = vmatprep.subr.mxu1 %v472_v11  ;;  %v2834_v1 = vld [vmem:[%s2720_s15 + $0xe0] sm:$0xff]  ;;  %v1017_v5 = vld [vmem:[#allocation8 + $0x18] sm:$0xff]  ;;  %v743_v6 = vld [vmem:[#allocation7 + $0x10] sm:$0xff] }
  0x94   : > { %1779 = vmatpush3.msra.mxu0 %v472_v11  ;;  %2023 = vmatpush3.msra.mxu1 %v472_v11  ;;  %v1016_v7 = vld [vmem:[#allocation8 + $0x10] sm:$0xff]  ;;  %v451_v10 = vld [vmem:[%s2720_s15 + $0x78] sm:$0xff] }
  0x95   : > { %1780 = vmatprep.subr.mxu0 %v471_v12  ;;  %2008 = vmatprep.subr.mxu1 %v471_v12  ;;  %v450_v8 = vld [vmem:[%s2720_s15 + $0x70] sm:$0xff]  ;;  %v2852_v11 = vld [vmem:[%s2720_s15 + $0xf8] sm:$0xff] }
  0x96   : > { %1781 = vmatpush3.msra.mxu0 %v471_v12  ;;  %2024 = vmatpush3.msra.mxu1 %v471_v12  ;;  %v2848_v9 = vld [vmem:[%s2720_s15 + $0xf0] sm:$0xff]  ;;  %v742_v12 = vld [vmem:[#allocation7 + $0x8] sm:$0xff] }
  0x97   : > { %1782 = vmatprep.subr.mxu0 %v470_v13  ;;  %2009 = vmatprep.subr.mxu1 %v470_v13 }
  0x98   : > { %1783 = vmatpush3.msra.mxu0 %v470_v13  ;;  %2025 = vmatpush3.msra.mxu1 %v470_v13  ;;  %v1015_v13 = vld [vmem:[#allocation8 + $0x8] sm:$0xff] }
  0x99   : > { %1784 = vmatprep.subr.mxu0 %v469_v14  ;;  %2010 = vmatprep.subr.mxu1 %v469_v14 }
  0x9a   : > { %1785 = vmatpush3.msra.mxu0 %v469_v14  ;;  %2026 = vmatpush3.msra.mxu1 %v469_v14  ;;  %v741_v14 = vld [vmem:[#allocation7] sm:$0xff] }
  0x9b   : > { %1786 = vmatprep.subr.mxu0 %v468_v15  ;;  %2011 = vmatprep.subr.mxu1 %v468_v15 }
  0x9c   : > { %1787 = vmatpush3.msra.mxu0 %v468_v15  ;;  %2027 = vmatpush3.msra.mxu1 %v468_v15  ;;  %v1014_v15 = vld [vmem:[#allocation8] sm:$0xff] }
  0x9d   : > { %1788 = vmatprep.mubr.f32.mxu0 %v2735_v16  ;;  %1812 = vmatprep.mubr.f32.mxu1 %v2738_v17 }
  0x9e   : > { %1789 = vmatmul.mubr.f32.vlgmr.msra.gmra.mxu0 %v2741_v18  ;;  %1813 = vmatmul.mubr.f32.vlgmr.msra.gmra.mxu1 %v2744_v19 }
  0x9f   : > { %1836 = vmatprep.subr.mxu1 %v756_v20  ;;  %1916 = vmatprep.subr.mxu0 %v1029_v21 }
  0xa0   : > { %1837 = vmatpush3.msra.mxu1 %v756_v20  ;;  %1917 = vmatpush3.msra.mxu0 %v1029_v21 }
  0xa1   : > { %1838 = vmatprep.subr.mxu1 %v755_v22  ;;  %1918 = vmatprep.subr.mxu0 %v1028_v23 }
  0xa2   : > { %1791 = vmatprep.mubr.f32.mxu0 %v2751_v24  ;;  %1815 = vmatprep.mubr.f32.mxu1 %v2754_v25 }
  0xa3   : > { %1839 = vmatpush3.msra.mxu1 %v755_v22  ;;  %1919 = vmatpush3.msra.mxu0 %v1028_v23 }
  0xa4   : > { %1792 = vmatmul.mubr.f32.gmra.mxu0 %v2757_v26  ;;  %1816 = vmatmul.mubr.f32.gmra.mxu1 %v2760_v27 }
  0xa5   : > { %1840 = vmatprep.subr.mxu1 %v754_v28  ;;  %1920 = vmatprep.subr.mxu0 %v1027_v29 }
  0xa6   : > { %1841 = vmatpush3.msra.mxu1 %v754_v28  ;;  %1921 = vmatpush3.msra.mxu0 %v1027_v29 }
  0xa7   : > { %1842 = vmatprep.subr.mxu1 %v753_v30  ;;  %1922 = vmatprep.subr.mxu0 %v1026_v31 }
  0xa8   : > { %1794 = vmatprep.mubr.f32.mxu0 %v2767_v32  ;;  %1818 = vmatprep.mubr.f32.mxu1 %v2770_v33 }
  0xa9   : > { %1843 = vmatpush3.msra.mxu1 %v753_v30  ;;  %1923 = vmatpush3.msra.mxu0 %v1026_v31 }
  0xaa   : > { %1795 = vmatmul.mubr.f32.gmra.mxu0 %v2773_v34  ;;  %1819 = vmatmul.mubr.f32.gmra.mxu1 %v2776_v35 }
  0xab   : > { %1844 = vmatprep.subr.mxu1 %v752_v36  ;;  %1924 = vmatprep.subr.mxu0 %v1025_v37 }
  0xac   : > { %1845 = vmatpush3.msra.mxu1 %v752_v36  ;;  %1925 = vmatpush3.msra.mxu0 %v1025_v37 }
  0xad   : > { %1846 = vmatprep.subr.mxu1 %v751_v38  ;;  %1926 = vmatprep.subr.mxu0 %v1024_v39 }
  0xae   : > { %1797 = vmatprep.mubr.f32.mxu0 %v2783_v40  ;;  %1821 = vmatprep.mubr.f32.mxu1 %v2786_v41 }
  0xaf   : > { %1847 = vmatpush3.msra.mxu1 %v751_v38  ;;  %1927 = vmatpush3.msra.mxu0 %v1024_v39 }
  0xb0   : > { %1798 = vmatmul.mubr.f32.gmra.mxu0 %v2789_v42  ;;  %1822 = vmatmul.mubr.f32.gmra.mxu1 %v2792_v43 }
  0xb1   : > { %1848 = vmatprep.subr.mxu1 %v750_v44  ;;  %1928 = vmatprep.subr.mxu0 %v1023_v45 }
  0xb2   : > { %1849 = vmatpush3.msra.mxu1 %v750_v44  ;;  %1929 = vmatpush3.msra.mxu0 %v1023_v45 }
  0xb3   : > { %1850 = vmatprep.subr.mxu1 %v749_v46  ;;  %1930 = vmatprep.subr.mxu0 %v1022_v47 }
  0xb4   : > { %1800 = vmatprep.mubr.f32.mxu0 %v2799_v48  ;;  %1824 = vmatprep.mubr.f32.mxu1 %v2802_v49 }
  0xb5   : > { %1851 = vmatpush3.msra.mxu1 %v749_v46  ;;  %1931 = vmatpush3.msra.mxu0 %v1022_v47 }
  0xb6   : > { %1801 = vmatmul.mubr.f32.gmra.mxu0 %v2805_v50  ;;  %1825 = vmatmul.mubr.f32.gmra.mxu1 %v2808_v51 }
  0xb7   : > { %1852 = vmatprep.subr.mxu1 %v748_v52  ;;  %1932 = vmatprep.subr.mxu0 %v1021_v53 }
  0xb8   : > { %1853 = vmatpush3.msra.mxu1 %v748_v52  ;;  %1933 = vmatpush3.msra.mxu0 %v1021_v53 }
  0xb9   : > { %1854 = vmatprep.subr.mxu1 %v747_v54  ;;  %1934 = vmatprep.subr.mxu0 %v1020_v55 }
  0xba   : > { %1803 = vmatprep.mubr.f32.mxu0 %v2815_v56  ;;  %1827 = vmatprep.mubr.f32.mxu1 %v2818_v57 }
  0xbb   : > { %1855 = vmatpush3.msra.mxu1 %v747_v54  ;;  %1935 = vmatpush3.msra.mxu0 %v1020_v55 }
  0xbc   : > { %1804 = vmatmul.mubr.f32.gmra.mxu0 %v2821_v58  ;;  %1828 = vmatmul.mubr.f32.gmra.mxu1 %v2824_v59 }
  0xbd   : > { %1856 = vmatprep.subr.mxu1 %v746_v60  ;;  %1936 = vmatprep.subr.mxu0 %v1019_v61 }
  0xbe   : > { %1857 = vmatpush3.msra.mxu1 %v746_v60  ;;  %1937 = vmatpush3.msra.mxu0 %v1019_v61 }
  0xbf   : > { %1858 = vmatprep.subr.mxu1 %v745_v62  ;;  %1938 = vmatprep.subr.mxu0 %v1018_v63 }
  0xc0   : > { %1806 = vmatprep.mubr.f32.mxu0 %v2831_v0  ;;  %1830 = vmatprep.mubr.f32.mxu1 %v2834_v1 }
  0xc1   : > { %1859 = vmatpush3.msra.mxu1 %v745_v62  ;;  %1939 = vmatpush3.msra.mxu0 %v1018_v63 }
  0xc2   : > { %1807 = vmatmul.mubr.f32.gmra.mxu0 %v2837_v2  ;;  %1831 = vmatmul.mubr.f32.gmra.mxu1 %v2840_v3 }
  0xc3   : > { %1860 = vmatprep.subr.mxu1 %v744_v4  ;;  %1940 = vmatprep.subr.mxu0 %v1017_v5 }
  0xc4   : > { %1861 = vmatpush3.msra.mxu1 %v744_v4  ;;  %1941 = vmatpush3.msra.mxu0 %v1017_v5 }
  0xc5   : > { %1862 = vmatprep.subr.mxu1 %v743_v6  ;;  %1942 = vmatprep.subr.mxu0 %v1016_v7 }
  0xc6   : > { %1809 = vmatprep.mubr.f32.mxu0 %v450_v8  ;;  %1833 = vmatprep.mubr.f32.mxu1 %v2848_v9 }
  0xc7   : > { %1863 = vmatpush3.msra.mxu1 %v743_v6  ;;  %1943 = vmatpush3.msra.mxu0 %v1016_v7 }
  0xc8   : > { %1810 = vmatmul.mubr.f32.gmra.mxu0 %v451_v10  ;;  %1834 = vmatmul.mubr.f32.gmra.mxu1 %v2852_v11 }
  0xc9   : > { %1864 = vmatprep.subr.mxu1 %v742_v12  ;;  %1944 = vmatprep.subr.mxu0 %v1015_v13 }
  0xca   : > { %1865 = vmatpush3.msra.mxu1 %v742_v12  ;;  %1945 = vmatpush3.msra.mxu0 %v1015_v13 }
  0xcb   : > { %1866 = vmatprep.subr.mxu1 %v741_v14  ;;  %1946 = vmatprep.subr.mxu0 %v1014_v15 }
  0xcc   : > { %1867 = vmatpush3.msra.mxu1 %v741_v14  ;;  %1868 = vmatprep.mubr.f32.mxu1 %v2735_v16 }
  0xcd   : > { %1947 = vmatpush3.msra.mxu0 %v1014_v15  ;;  %1948 = vmatprep.mubr.f32.mxu0 %v2735_v16 }
  0xce   : > { %1869 = vmatmul.mubr.f32.vlgmr.msra.gmra.mxu1 %v2741_v18  ;;  %1949 = vmatmul.mubr.f32.vlgmr.msra.gmra.mxu0 %v2741_v18 }
  0xcf   : > { %1871 = vmatprep.mubr.f32.mxu1 %v2751_v24  ;;  %1951 = vmatprep.mubr.f32.mxu0 %v2751_v24 }
  0xd2   : > { %1872 = vmatmul.mubr.f32.gmra.mxu1 %v2757_v26  ;;  %1952 = vmatmul.mubr.f32.gmra.mxu0 %v2757_v26 }
  0xd3   : > { %1874 = vmatprep.mubr.f32.mxu1 %v2767_v32  ;;  %1954 = vmatprep.mubr.f32.mxu0 %v2767_v32 }
  0xd6   : > { %1875 = vmatmul.mubr.f32.gmra.mxu1 %v2773_v34  ;;  %1955 = vmatmul.mubr.f32.gmra.mxu0 %v2773_v34 }
  0xd7   : > { %1877 = vmatprep.mubr.f32.mxu1 %v2783_v40  ;;  %1957 = vmatprep.mubr.f32.mxu0 %v2783_v40 }
  0xda   : > { %1878 = vmatmul.mubr.f32.gmra.mxu1 %v2789_v42  ;;  %1958 = vmatmul.mubr.f32.gmra.mxu0 %v2789_v42 }
  0xdb   : > { %1880 = vmatprep.mubr.f32.mxu1 %v2799_v48  ;;  %1960 = vmatprep.mubr.f32.mxu0 %v2799_v48 }
  0xde   : > { %1881 = vmatmul.mubr.f32.gmra.mxu1 %v2805_v50  ;;  %1961 = vmatmul.mubr.f32.gmra.mxu0 %v2805_v50 }
  0xdf   : > { %1883 = vmatprep.mubr.f32.mxu1 %v2815_v56  ;;  %1963 = vmatprep.mubr.f32.mxu0 %v2815_v56 }
  0xe2   : > { %1884 = vmatmul.mubr.f32.gmra.mxu1 %v2821_v58  ;;  %1964 = vmatmul.mubr.f32.gmra.mxu0 %v2821_v58 }
  0xe3   : > { %1886 = vmatprep.mubr.f32.mxu1 %v2831_v0  ;;  %1966 = vmatprep.mubr.f32.mxu0 %v2831_v0 }
  0xe6   : > { %1887 = vmatmul.mubr.f32.gmra.mxu1 %v2837_v2  ;;  %1967 = vmatmul.mubr.f32.gmra.mxu0 %v2837_v2 }
  0xe7   : > { %1889 = vmatprep.mubr.f32.mxu1 %v450_v8  ;;  %1969 = vmatprep.mubr.f32.mxu0 %v450_v8 }
  0xea   : > { %1890 = vmatmul.mubr.f32.gmra.mxu1 %v451_v10  ;;  %1970 = vmatmul.mubr.f32.gmra.mxu0 %v451_v10 }
  0xeb   : > { %1892 = vmatprep.mubr.f32.mxu1 %v2738_v17  ;;  %1972 = vmatprep.mubr.f32.mxu0 %v2738_v17 }
  0xee   : > { %1893 = vmatmul.mubr.f32.gmra.mxu1 %v2744_v19  ;;  %1973 = vmatmul.mubr.f32.gmra.mxu0 %v2744_v19 }
  0xef   : > { %1895 = vmatprep.mubr.f32.mxu1 %v2754_v25  ;;  %1975 = vmatprep.mubr.f32.mxu0 %v2754_v25 }
  0xf2   : > { %1896 = vmatmul.mubr.f32.gmra.mxu1 %v2760_v27  ;;  %1976 = vmatmul.mubr.f32.gmra.mxu0 %v2760_v27 }
  0xf3   : > { %1898 = vmatprep.mubr.f32.mxu1 %v2770_v33  ;;  %1978 = vmatprep.mubr.f32.mxu0 %v2770_v33 }
  0xf6   : > { %1899 = vmatmul.mubr.f32.gmra.mxu1 %v2776_v35  ;;  %1979 = vmatmul.mubr.f32.gmra.mxu0 %v2776_v35 }
  0xf7   : > { %1901 = vmatprep.mubr.f32.mxu1 %v2786_v41  ;;  %1981 = vmatprep.mubr.f32.mxu0 %v2786_v41 }
  0xfa   : > { %1902 = vmatmul.mubr.f32.gmra.mxu1 %v2792_v43  ;;  %1982 = vmatmul.mubr.f32.gmra.mxu0 %v2792_v43 }
  0xfb   : > { %1904 = vmatprep.mubr.f32.mxu1 %v2802_v49  ;;  %1984 = vmatprep.mubr.f32.mxu0 %v2802_v49 }
  0xfe   : > { %1905 = vmatmul.mubr.f32.gmra.mxu1 %v2808_v51  ;;  %1985 = vmatmul.mubr.f32.gmra.mxu0 %v2808_v51 }
  0xff   : > { %1907 = vmatprep.mubr.f32.mxu1 %v2818_v57  ;;  %1987 = vmatprep.mubr.f32.mxu0 %v2818_v57 }
 0x102   : > { %1908 = vmatmul.mubr.f32.gmra.mxu1 %v2824_v59  ;;  %1988 = vmatmul.mubr.f32.gmra.mxu0 %v2824_v59 }
 0x103   : > { %1910 = vmatprep.mubr.f32.mxu1 %v2834_v1  ;;  %1990 = vmatprep.mubr.f32.mxu0 %v2834_v1 }
 0x106   : > { %1911 = vmatmul.mubr.f32.gmra.mxu1 %v2840_v3  ;;  %1991 = vmatmul.mubr.f32.gmra.mxu0 %v2840_v3 }
 0x107   : > { %1913 = vmatprep.mubr.f32.mxu1 %v2848_v9  ;;  %1993 = vmatprep.mubr.f32.mxu0 %v2848_v9 }
 0x10a   : > { %1914 = vmatmul.mubr.f32.gmra.mxu1 %v2852_v11  ;;  %1994 = vmatmul.mubr.f32.gmra.mxu0 %v2852_v11 }
 0x15e   : > { %v1790_v16 = vpop.f32.mrf.mxu0  ;;  %v1814_v17 = vpop.f32.mrf.mxu1 }
 0x15f   : > { %710 = vst [vmem:[%s2918_s29 + $0x8] sm:$0xff] %v1790_v16  ;;  %726 = vst [vmem:[%s2918_s29 + $0x88] sm:$0xff] %v1814_v17 }
 0x160   : > { %v550_v18 = vpop.f32.mrf.mxu0  ;;  %v630_v19 = vpop.f32.mrf.mxu1 }
 0x161   : > { %709 = vst [vmem:[%s2918_s29] sm:$0xff] %v550_v18  ;;  %725 = vst [vmem:[%s2918_s29 + $0x80] sm:$0xff] %v630_v19 }
 0x164   : > { %v1793_v20 = vpop.f32.mrf.mxu0  ;;  %v1817_v21 = vpop.f32.mrf.mxu1 }
 0x165   : > { %712 = vst [vmem:[%s2918_s29 + $0x18] sm:$0xff] %v1793_v20  ;;  %728 = vst [vmem:[%s2918_s29 + $0x98] sm:$0xff] %v1817_v21 }
 0x166   : > { %v560_v22 = vpop.f32.mrf.mxu0  ;;  %v640_v23 = vpop.f32.mrf.mxu1 }
 0x167   : > { %711 = vst [vmem:[%s2918_s29 + $0x10] sm:$0xff] %v560_v22  ;;  %727 = vst [vmem:[%s2918_s29 + $0x90] sm:$0xff] %v640_v23 }
 0x16a   : > { %v1796_v24 = vpop.f32.mrf.mxu0  ;;  %v1820_v25 = vpop.f32.mrf.mxu1 }
 0x16b   : > { %714 = vst [vmem:[%s2918_s29 + $0x28] sm:$0xff] %v1796_v24  ;;  %730 = vst [vmem:[%s2918_s29 + $0xa8] sm:$0xff] %v1820_v25 }
 0x16c   : > { %v570_v26 = vpop.f32.mrf.mxu0  ;;  %v650_v27 = vpop.f32.mrf.mxu1 }
 0x16d   : > { %713 = vst [vmem:[%s2918_s29 + $0x20] sm:$0xff] %v570_v26  ;;  %729 = vst [vmem:[%s2918_s29 + $0xa0] sm:$0xff] %v650_v27 }
 0x170   : > { %v1799_v28 = vpop.f32.mrf.mxu0  ;;  %v1823_v29 = vpop.f32.mrf.mxu1 }
 0x171   : > { %716 = vst [vmem:[%s2918_s29 + $0x38] sm:$0xff] %v1799_v28  ;;  %732 = vst [vmem:[%s2918_s29 + $0xb8] sm:$0xff] %v1823_v29 }
 0x172   : > { %v580_v30 = vpop.f32.mrf.mxu0  ;;  %v660_v31 = vpop.f32.mrf.mxu1 }
 0x173   : > { %715 = vst [vmem:[%s2918_s29 + $0x30] sm:$0xff] %v580_v30  ;;  %731 = vst [vmem:[%s2918_s29 + $0xb0] sm:$0xff] %v660_v31 }
 0x176   : > { %v1802_v32 = vpop.f32.mrf.mxu0  ;;  %v1826_v33 = vpop.f32.mrf.mxu1 }
 0x177   : > { %718 = vst [vmem:[%s2918_s29 + $0x48] sm:$0xff] %v1802_v32  ;;  %734 = vst [vmem:[%s2918_s29 + $0xc8] sm:$0xff] %v1826_v33 }
 0x178   : > { %v590_v34 = vpop.f32.mrf.mxu0  ;;  %v670_v35 = vpop.f32.mrf.mxu1 }
 0x179   : > { %717 = vst [vmem:[%s2918_s29 + $0x40] sm:$0xff] %v590_v34  ;;  %733 = vst [vmem:[%s2918_s29 + $0xc0] sm:$0xff] %v670_v35 }
 0x17c   : > { %v1805_v36 = vpop.f32.mrf.mxu0  ;;  %v1829_v37 = vpop.f32.mrf.mxu1 }
 0x17d   : > { %720 = vst [vmem:[%s2918_s29 + $0x58] sm:$0xff] %v1805_v36  ;;  %736 = vst [vmem:[%s2918_s29 + $0xd8] sm:$0xff] %v1829_v37 }
 0x17e   : > { %v600_v38 = vpop.f32.mrf.mxu0  ;;  %v680_v39 = vpop.f32.mrf.mxu1 }
 0x17f   : > { %719 = vst [vmem:[%s2918_s29 + $0x50] sm:$0xff] %v600_v38  ;;  %735 = vst [vmem:[%s2918_s29 + $0xd0] sm:$0xff] %v680_v39 }
 0x182   : > { %v1808_v40 = vpop.f32.mrf.mxu0  ;;  %v1832_v41 = vpop.f32.mrf.mxu1 }
 0x183   : > { %722 = vst [vmem:[%s2918_s29 + $0x68] sm:$0xff] %v1808_v40  ;;  %738 = vst [vmem:[%s2918_s29 + $0xe8] sm:$0xff] %v1832_v41 }
 0x184   : > { %v610_v42 = vpop.f32.mrf.mxu0  ;;  %v690_v43 = vpop.f32.mrf.mxu1 }
 0x185   : > { %721 = vst [vmem:[%s2918_s29 + $0x60] sm:$0xff] %v610_v42  ;;  %737 = vst [vmem:[%s2918_s29 + $0xe0] sm:$0xff] %v690_v43 }
 0x188   : > { %v1811_v44 = vpop.f32.mrf.mxu0  ;;  %v1835_v45 = vpop.f32.mrf.mxu1 }
 0x189   : > { %724 = vst [vmem:[%s2918_s29 + $0x78] sm:$0xff] %v1811_v44  ;;  %740 = vst [vmem:[%s2918_s29 + $0xf8] sm:$0xff] %v1835_v45 }
 0x18a   : > { %v620_v46 = vpop.f32.mrf.mxu0  ;;  %v700_v47 = vpop.f32.mrf.mxu1 }
 0x18b   : > { %723 = vst [vmem:[%s2918_s29 + $0x70] sm:$0xff] %v620_v46  ;;  %739 = vst [vmem:[%s2918_s29 + $0xf0] sm:$0xff] %v700_v47 }
 0x18c   : > { %2294 = shalt.err (!%p2291_p9)
}
 0x18d   : > { %s2295_s13 = scalar_lea.hbm %s2961_s3, 4096  ;;  %s2299_s10 = scalar_lea.hbm %s3244_s2, 16384 }
 0x18e   : > { %p2296_p10 = scmp.ne.s32.totalorder %s2961_s3, %s2295_s13  ;;  %p2300_p3 = scmp.lt.s32.totalorder %s2961_s3, %s3244_s2 }
 0x18f   : > { %p2301_p13 = scmp.lt.s32.totalorder %s2299_s10, %s2295_s13 }
 0x190   : > { %p2297_p6 = pnand %p2296_p10, %p2661_p7 }
 0x191   : > { %p2302_p4 = por %p2301_p13, %p2300_p3 }
 0x192   : > { %p2298_p12 = pneg %p2297_p6 }
 0x194   : > { %p2303_p5 = pnand %p2302_p4, %p2298_p12 }
 0x196   : > { %2306 = shalt.err (!%p2303_p5)
}
 0x197   : > { %s2474_s20 = smov 128   ;;  %s2475_s11 = smov 8   ;;  %v1870_v48 = vpop.f32.mrf.mxu1  ;;  %v1950_v49 = vpop.f32.mrf.mxu0 }
 0x198   : > { %2042 = dma.vmem_to_hbm [thread:$0]  (%p2661_p7), %s2963_s5, 4096, %s2961_s3, %s1288_s4, %s2474_s20, %s2474_s20, %s2475_s11  }
 0x199   : > { %s2994_s16 = scalar_lea.vmem [#allocation11], %s2954_s6  ;;  %s2998_s1 = scalar_lea.vmem [#allocation13], %s2954_s6  ;;  %v823_v50 = vpop.f32.mrf.mxu1  ;;  %v1096_v51 = vpop.f32.mrf.mxu0 }
 0x19a   : > { %983 = vst [vmem:[%s2994_s16 + $0x8] sm:$0xff] %v1870_v48  ;;  %1256 = vst [vmem:[%s2998_s1 + $0x8] sm:$0xff] %v1950_v49  ;;  %s3026_s21 = sadd.s32 1, %s2453_s28  ;;  %s1292_s12 = sand.u32 1, %s2567_s8  }
 0x19b   : > { %982 = vst [vmem:[%s2994_s16] sm:$0xff] %v823_v50  ;;  %1255 = vst [vmem:[%s2998_s1] sm:$0xff] %v1096_v51  ;;  %v1873_v52 = vpop.f32.mrf.mxu1  ;;  %v1953_v53 = vpop.f32.mrf.mxu0  ;;  %s1325_s18 = ssub.s32 0, %s3026_s21  ;;  %p1324_p7 = scmp.lt.s32.totalorder %s3026_s21, 0 }
 0x19c   : > { %985 = vst [vmem:[%s2994_s16 + $0x18] sm:$0xff] %v1873_v52  ;;  %1258 = vst [vmem:[%s2998_s1 + $0x18] sm:$0xff] %v1953_v53  ;;  %s1598_s28 = smin.u32 %s1325_s18, %s3026_s21  ;;  %s1344_s17 = sshll.u32 %s2994_s16, 4  ;;  %s3077_s17 = int_to_ptr.vmem [resolvable:$true] %s1344_s17 }
 0x19d   : > { %v833_v54 = vpop.f32.mrf.mxu1  ;;  %v1106_v55 = vpop.f32.mrf.mxu0  ;;  %s1327_s5 = sand.u32 1, %s1598_s28   ;;  %s1375_s13 = sshll.u32 %s2998_s1, 4  ;;  %s3084_s13 = int_to_ptr.vmem [resolvable:$true] %s1375_s13 }
 0x19e   : > { %984 = vst [vmem:[%s2994_s16 + $0x10] sm:$0xff] %v833_v54  ;;  %1257 = vst [vmem:[%s2998_s1 + $0x10] sm:$0xff] %v1106_v55  ;;  %s1328_s6 = ssub.s32 0, %s1327_s5  ;;  %s3246_s29 = sld [smem:[#allocation34_spill]] }
 0x19f   : > { %v1876_v56 = vpop.f32.mrf.mxu1  ;;  %v1956_v57 = vpop.f32.mrf.mxu0  ;;  %s3277_s6 = smov (!%p1324_p7, %s1328_s6), %s1327_s5  ;;  %s3248_s21 = sld [smem:[#allocation35_spill]] }
 0x1a0   : > { %987 = vst [vmem:[%s2994_s16 + $0x28] sm:$0xff] %v1876_v56  ;;  %1260 = vst [vmem:[%s2998_s1 + $0x28] sm:$0xff] %v1956_v57  ;;  %p1600_p0 = scmp.lt.s32.totalorder %s3277_s6, 0  ;;  %s1334_s3 = sadd.s32 2, %s3277_s6 }
 0x1a1   : > { %v843_v58 = vpop.f32.mrf.mxu1  ;;  %v1116_v59 = vpop.f32.mrf.mxu0  ;;  %s3088_s5 = scalar_lea.sflag [#allocation12], %s1292_s12 }
 0x1a2   : > { %986 = vst [vmem:[%s2994_s16 + $0x20] sm:$0xff] %v843_v58  ;;  %1259 = vst [vmem:[%s2998_s1 + $0x20] sm:$0xff] %v1116_v59  ;;  %s3279_s3 = smov (!%p1600_p0, %s1334_s3), %s3277_s6  ;;  %s2307_s6 = scalar_lea.vmem %s3077_s17, 4096 }
 0x1a3   : > { %v1879_v60 = vpop.f32.mrf.mxu1  ;;  %v1959_v61 = vpop.f32.mrf.mxu0  ;;  %s1602_s4 = sshll.u32 %s3279_s3, 6  ;;  %p2308_p1 = scmp.ne.s32.totalorder %s3077_s17, %s2307_s6 }
 0x1a4   : > { %989 = vst [vmem:[%s2994_s16 + $0x38] sm:$0xff] %v1879_v60  ;;  %1262 = vst [vmem:[%s2998_s1 + $0x38] sm:$0xff] %v1959_v61  ;;  %s1341_s22 = sadd.s32 %s1602_s4, %s1595_s14  ;;  %s3247_s10 = smov %s3246_s29 }
 0x1a5   : > { %v853_v62 = vpop.f32.mrf.mxu1  ;;  %v1126_v63 = vpop.f32.mrf.mxu0  ;;  %s1603_s19 = sshll.u32 %s1341_s22, 7  ;;  %s3249_s18 = smov %s3248_s21 }
 0x1a6   : > { %988 = vst [vmem:[%s2994_s16 + $0x30] sm:$0xff] %v853_v62  ;;  %1261 = vst [vmem:[%s2998_s1 + $0x30] sm:$0xff] %v1126_v63  ;;  %s3075_s9 = scalar_lea.hbm %s3246_s29, %s1603_s19  ;;  %s3082_s28 = scalar_lea.hbm %s3248_s21, %s1603_s19 }
 0x1a7   : > { %v1882_v0 = vpop.f32.mrf.mxu1  ;;  %v1962_v1 = vpop.f32.mrf.mxu0  ;;  %p2309_p11 = pnand %p2308_p1, %p2591_p8  ;;  %s2476_s3 = smov [#allocation11]  }
 0x1a8   : > { %991 = vst [vmem:[%s2994_s16 + $0x48] sm:$0xff] %v1882_v0  ;;  %1264 = vst [vmem:[%s2998_s1 + $0x48] sm:$0xff] %v1962_v1  ;;  %s2311_s4 = sshll.u32 %s2476_s3, 4  ;;  %s2312_s4 = int_to_ptr.vmem [resolvable:$false] %s2311_s4 }
 0x1a9   : > { %v863_v2 = vpop.f32.mrf.mxu1  ;;  %v1136_v3 = vpop.f32.mrf.mxu0  ;;  %p2310_p2 = pneg %p2309_p11  ;;  %s2313_s22 = scalar_lea.vmem %s2312_s4, 8192 }
 0x1aa   : > { %990 = vst [vmem:[%s2994_s16 + $0x40] sm:$0xff] %v863_v2  ;;  %1263 = vst [vmem:[%s2998_s1 + $0x40] sm:$0xff] %v1136_v3  ;;  %p2314_p9 = scmp.lt.s32.totalorder %s3077_s17, %s2312_s4  ;;  %p2315_p10 = scmp.lt.s32.totalorder %s2313_s22, %s2307_s6 }
 0x1ab   : > { %v1885_v4 = vpop.f32.mrf.mxu1  ;;  %v1965_v5 = vpop.f32.mrf.mxu0 }
 0x1ac   : > { %993 = vst [vmem:[%s2994_s16 + $0x58] sm:$0xff] %v1885_v4  ;;  %1266 = vst [vmem:[%s2998_s1 + $0x58] sm:$0xff] %v1965_v5  ;;  %p2316_p6 = por %p2315_p10, %p2314_p9 }
 0x1ad   : > { %v873_v6 = vpop.f32.mrf.mxu1  ;;  %v1146_v7 = vpop.f32.mrf.mxu0 }
 0x1ae   : > { %992 = vst [vmem:[%s2994_s16 + $0x50] sm:$0xff] %v873_v6  ;;  %1265 = vst [vmem:[%s2998_s1 + $0x50] sm:$0xff] %v1146_v7  ;;  %p2317_p12 = pnand %p2316_p6, %p2310_p2 }
 0x1af   : > { %v1888_v8 = vpop.f32.mrf.mxu1  ;;  %v1968_v9 = vpop.f32.mrf.mxu0 }
 0x1b0   : > { %995 = vst [vmem:[%s2994_s16 + $0x68] sm:$0xff] %v1888_v8  ;;  %1268 = vst [vmem:[%s2998_s1 + $0x68] sm:$0xff] %v1968_v9 }
 0x1b1   : > { %v883_v10 = vpop.f32.mrf.mxu1  ;;  %v1156_v11 = vpop.f32.mrf.mxu0 }
 0x1b2   : > { %994 = vst [vmem:[%s2994_s16 + $0x60] sm:$0xff] %v883_v10  ;;  %1267 = vst [vmem:[%s2998_s1 + $0x60] sm:$0xff] %v1156_v11 }
 0x1b3   : > { %v1891_v12 = vpop.f32.mrf.mxu1  ;;  %v1971_v13 = vpop.f32.mrf.mxu0 }
 0x1b4   : > { %997 = vst [vmem:[%s2994_s16 + $0x78] sm:$0xff] %v1891_v12  ;;  %1270 = vst [vmem:[%s2998_s1 + $0x78] sm:$0xff] %v1971_v13 }
 0x1b5   : > { %v893_v14 = vpop.f32.mrf.mxu1  ;;  %v1166_v15 = vpop.f32.mrf.mxu0 }
 0x1b6   : > { %996 = vst [vmem:[%s2994_s16 + $0x70] sm:$0xff] %v893_v14  ;;  %1269 = vst [vmem:[%s2998_s1 + $0x70] sm:$0xff] %v1166_v15 }
 0x1b7   : > { %v1894_v16 = vpop.f32.mrf.mxu1  ;;  %v1974_v17 = vpop.f32.mrf.mxu0 }
 0x1b8   : > { %999 = vst [vmem:[%s2994_s16 + $0x88] sm:$0xff] %v1894_v16  ;;  %1272 = vst [vmem:[%s2998_s1 + $0x88] sm:$0xff] %v1974_v17 }
 0x1b9   : > { %v903_v18 = vpop.f32.mrf.mxu1  ;;  %v1176_v19 = vpop.f32.mrf.mxu0 }
 0x1ba   : > { %998 = vst [vmem:[%s2994_s16 + $0x80] sm:$0xff] %v903_v18  ;;  %1271 = vst [vmem:[%s2998_s1 + $0x80] sm:$0xff] %v1176_v19 }
 0x1bb   : > { %v1897_v20 = vpop.f32.mrf.mxu1  ;;  %v1977_v21 = vpop.f32.mrf.mxu0 }
 0x1bc   : > { %1001 = vst [vmem:[%s2994_s16 + $0x98] sm:$0xff] %v1897_v20  ;;  %1274 = vst [vmem:[%s2998_s1 + $0x98] sm:$0xff] %v1977_v21 }
 0x1bd   : > { %v913_v22 = vpop.f32.mrf.mxu1  ;;  %v1186_v23 = vpop.f32.mrf.mxu0 }
 0x1be   : > { %1000 = vst [vmem:[%s2994_s16 + $0x90] sm:$0xff] %v913_v22  ;;  %1273 = vst [vmem:[%s2998_s1 + $0x90] sm:$0xff] %v1186_v23 }
 0x1bf   : > { %v1900_v24 = vpop.f32.mrf.mxu1  ;;  %v1980_v25 = vpop.f32.mrf.mxu0 }
 0x1c0   : > { %1003 = vst [vmem:[%s2994_s16 + $0xa8] sm:$0xff] %v1900_v24  ;;  %1276 = vst [vmem:[%s2998_s1 + $0xa8] sm:$0xff] %v1980_v25 }
 0x1c1   : > { %v923_v26 = vpop.f32.mrf.mxu1  ;;  %v1196_v27 = vpop.f32.mrf.mxu0 }
 0x1c2   : > { %1002 = vst [vmem:[%s2994_s16 + $0xa0] sm:$0xff] %v923_v26  ;;  %1275 = vst [vmem:[%s2998_s1 + $0xa0] sm:$0xff] %v1196_v27 }
 0x1c3   : > { %v1903_v28 = vpop.f32.mrf.mxu1  ;;  %v1983_v29 = vpop.f32.mrf.mxu0 }
 0x1c4   : > { %1005 = vst [vmem:[%s2994_s16 + $0xb8] sm:$0xff] %v1903_v28  ;;  %1278 = vst [vmem:[%s2998_s1 + $0xb8] sm:$0xff] %v1983_v29 }
 0x1c5   : > { %v933_v30 = vpop.f32.mrf.mxu1  ;;  %v1206_v31 = vpop.f32.mrf.mxu0 }
 0x1c6   : > { %1004 = vst [vmem:[%s2994_s16 + $0xb0] sm:$0xff] %v933_v30  ;;  %1277 = vst [vmem:[%s2998_s1 + $0xb0] sm:$0xff] %v1206_v31 }
 0x1c7   : > { %v1906_v32 = vpop.f32.mrf.mxu1  ;;  %v1986_v33 = vpop.f32.mrf.mxu0 }
 0x1c8   : > { %1007 = vst [vmem:[%s2994_s16 + $0xc8] sm:$0xff] %v1906_v32  ;;  %1280 = vst [vmem:[%s2998_s1 + $0xc8] sm:$0xff] %v1986_v33 }
 0x1c9   : > { %v943_v34 = vpop.f32.mrf.mxu1  ;;  %v1216_v35 = vpop.f32.mrf.mxu0 }
 0x1ca   : > { %1006 = vst [vmem:[%s2994_s16 + $0xc0] sm:$0xff] %v943_v34  ;;  %1279 = vst [vmem:[%s2998_s1 + $0xc0] sm:$0xff] %v1216_v35 }
 0x1cb   : > { %v1909_v36 = vpop.f32.mrf.mxu1  ;;  %v1989_v37 = vpop.f32.mrf.mxu0 }
 0x1cc   : > { %1009 = vst [vmem:[%s2994_s16 + $0xd8] sm:$0xff] %v1909_v36  ;;  %1282 = vst [vmem:[%s2998_s1 + $0xd8] sm:$0xff] %v1989_v37 }
 0x1cd   : > { %v953_v38 = vpop.f32.mrf.mxu1  ;;  %v1226_v39 = vpop.f32.mrf.mxu0 }
 0x1ce   : > { %1008 = vst [vmem:[%s2994_s16 + $0xd0] sm:$0xff] %v953_v38  ;;  %1281 = vst [vmem:[%s2998_s1 + $0xd0] sm:$0xff] %v1226_v39 }
 0x1cf   : > { %v1912_v40 = vpop.f32.mrf.mxu1  ;;  %v1992_v41 = vpop.f32.mrf.mxu0 }
 0x1d0   : > { %1011 = vst [vmem:[%s2994_s16 + $0xe8] sm:$0xff] %v1912_v40  ;;  %1284 = vst [vmem:[%s2998_s1 + $0xe8] sm:$0xff] %v1992_v41 }
 0x1d1   : > { %v963_v42 = vpop.f32.mrf.mxu1  ;;  %v1236_v43 = vpop.f32.mrf.mxu0 }
 0x1d2   : > { %1010 = vst [vmem:[%s2994_s16 + $0xe0] sm:$0xff] %v963_v42  ;;  %1283 = vst [vmem:[%s2998_s1 + $0xe0] sm:$0xff] %v1236_v43 }
 0x1d3   : > { %v1915_v44 = vpop.f32.mrf.mxu1  ;;  %v1995_v45 = vpop.f32.mrf.mxu0 }
 0x1d4   : > { %1013 = vst [vmem:[%s2994_s16 + $0xf8] sm:$0xff] %v1915_v44  ;;  %1286 = vst [vmem:[%s2998_s1 + $0xf8] sm:$0xff] %v1995_v45 }
 0x1d5   : > { %v973_v46 = vpop.f32.mrf.mxu1  ;;  %v1246_v47 = vpop.f32.mrf.mxu0 }
 0x1d6   : > { %1012 = vst [vmem:[%s2994_s16 + $0xf0] sm:$0xff] %v973_v46  ;;  %1285 = vst [vmem:[%s2998_s1 + $0xf0] sm:$0xff] %v1246_v47 }
 0x1d7   : > { %2320 = shalt.err (!%p2317_p12)
}
 0x1d8   : > { %s2321_s16 = scalar_lea.hbm %s3075_s9, 4096  ;;  %s2325_s19 = scalar_lea.hbm %s3247_s10, 16384 }
 0x1d9   : > { %p2322_p3 = scmp.ne.s32.totalorder %s3075_s9, %s2321_s16  ;;  %p2326_p5 = scmp.lt.s32.totalorder %s3075_s9, %s3247_s10 }
 0x1da   : > { %p2327_p7 = scmp.lt.s32.totalorder %s2325_s19, %s2321_s16 }
 0x1db   : > { %p2323_p13 = pnand %p2322_p3, %p2591_p8 }
 0x1dc   : > { %p2328_p0 = por %p2327_p7, %p2326_p5 }
 0x1dd   : > { %p2324_p4 = pneg %p2323_p13 }
 0x1df   : > { %p2329_p1 = pnand %p2328_p0, %p2324_p4 }
 0x1e1   : > { %2332 = shalt.err (!%p2329_p1)
}
 0x1e2   : > { %2043 = dma.vmem_to_hbm [thread:$0]  (%p2591_p8), %s3077_s17, 4096, %s3075_s9, %s3088_s5, %s2474_s20, %s2474_s20, %s2475_s11  }
 0x1e3   : > { %s2333_s29 = scalar_lea.vmem %s3084_s13, 4096  ;;  %s2477_s8 = smov [#allocation13]  }
 0x1e4   : > { %p2334_p11 = scmp.ne.s32.totalorder %s3084_s13, %s2333_s29  ;;  %s2337_s24 = sshll.u32 %s2477_s8, 4  ;;  %s2338_s24 = int_to_ptr.vmem [resolvable:$false] %s2337_s24 }
 0x1e5   : > { %s2339_s21 = scalar_lea.vmem %s2338_s24, 8192  ;;  %p2340_p10 = scmp.lt.s32.totalorder %s3084_s13, %s2338_s24 }
 0x1e6   : > { %p2335_p2 = pnand %p2334_p11, %p2591_p8  ;;  %p2341_p6 = scmp.lt.s32.totalorder %s2339_s21, %s2333_s29 }
 0x1e8   : > { %p2336_p9 = pneg %p2335_p2  ;;  %p2342_p12 = por %p2341_p6, %p2340_p10 }
 0x1ea   : > { %p2343_p3 = pnand %p2342_p12, %p2336_p9 }
 0x1ec   : > { %2346 = shalt.err (!%p2343_p3)
}
 0x1ed   : > { %s2347_s6 = scalar_lea.hbm %s3082_s28, 4096  ;;  %s2351_s3 = scalar_lea.hbm %s3249_s18, 16384 }
 0x1ee   : > { %p2348_p13 = scmp.ne.s32.totalorder %s3082_s28, %s2347_s6  ;;  %p2352_p7 = scmp.lt.s32.totalorder %s3082_s28, %s3249_s18 }
 0x1ef   : > { %p2353_p0 = scmp.lt.s32.totalorder %s2351_s3, %s2347_s6 }
 0x1f0   : > { %p2349_p4 = pnand %p2348_p13, %p2591_p8 }
 0x1f1   : > { %p2354_p1 = por %p2353_p0, %p2352_p7 }
 0x1f2   : > { %p2350_p5 = pneg %p2349_p4 }
 0x1f4   : > { %p2355_p11 = pnand %p2354_p1, %p2350_p5 }
 0x1f6   : > { %2358 = shalt.err (!%p2355_p11)
}
 0x1f7   : > { %2044 = dma.vmem_to_hbm [thread:$0]  (%p2591_p8), %s3084_s13, 4096, %s3082_s28, %s3088_s5, %s2474_s20, %s2474_s20, %s2475_s11  }
 0x1f8 PF: > { %s3250_s16 = sld [smem:[#allocation20_spill]]  ;;  %p2079_p2 = scmp.ge.s32.totalorder %s2465_s7, 2 }
 0x1f9   : > { %s3251_s1 = sld [smem:[#allocation23_spill]] }
 0x1fe   : > { %s1390_s12 = sand.u32 1, %s3250_s16  }
 0x1ff   : > { %p3252_p9 = scmp.ne.s32.totalorder %s3251_s1, 0  ;;  %s1391_s19 = scalar_lea.sflag [#allocation4], %s1390_s12 }
 0x201   : > { %p2063_p10 = pnand %p2079_p2, %p3252_p9 }
 0x203   : > { %p2064_p6 = pneg %p2063_p10 }
 0x205   : > { %2416 = dma.done.wait (%p2064_p6), %s1391_s19, 4096  }
 0x206   : > { %2418 = vsyncadd (%p2064_p6), %s1391_s19, 4294963200  ;;  %s3253_s15 = sadd.s32 4294967294, %s2465_s7   ;;  %s3254_s27 = sld [smem:[#allocation25_spill]] }
 0x207   : > { %s1399_s14 = sand.u32 1, %s3253_s15  }
 0x208   : > { %s1400_s20 = scalar_lea.sflag [#allocation12], %s1399_s14 }
 0x20c   : > { %p3255_p12 = scmp.ne.s32.totalorder %s3254_s27, 0 }
 0x20e   : > { %p2066_p3 = pnand %p2079_p2, %p3255_p12 }
 0x210   : > { %p2067_p13 = pneg %p2066_p3 }
 0x212   : > { %2420 = dma.done.wait (%p2067_p13), %s1400_s20, 8192  }
 0x213   : > { %2422 = vsyncadd (%p2067_p13), %s1400_s20, 4294959104  ;;  %s28_s7 = sadd.s32 1, %s2465_s7   ;;  %s3256_s21 = sld [smem:[#allocation19_spill]] }
 0x214   : > { %p25_p8 = scmp.ge.s32.totalorder %s28_s7, 6   ;;  %s3257_s11 = sld [smem:[#allocation29_spill]] }
 0x215   : > { %s3258_s27 = sld [smem:[#allocation21_spill]]  ;;  %s3262_s22 = smov %s2433_s23 }
 0x216   : > { %s3259_s28 = sld [smem:[#allocation22_spill]]  ;;  %s3263_s23 = smov %s2702_s30 }
 0x217   : > { %s3260_s29 = sld [smem:[#allocation26_spill]]  ;;  %s3264_s24 = smov %s2441_s25 }
 0x218   : > { %s3261_s13 = sld [smem:[#allocation28_spill]]  ;;  %s3265_s25 = smov %s2445_s26 }
 0x21a   : > { %s3266_s26 = smov %s3257_s11  ;;  %27 = sbr.rel (!%p25_p8) target bundleno = 20 (0x14), region = 125 }
 0x21e   : > { %s3267_s30 = smov %s3261_s13 }
 0x21f   :  { %1414 = vsyncpa [#allocation3], 1 }
 0x220   :  { %1416 = vsyncpa [#allocation3 + $0x1], 1 }
 0x221   :  { %1417 = vsyncpa [#allocation6], 1 }
 0x222   :  { %1418 = vsyncpa [#allocation9], 1 }
 0x223   :  { %1419 = vsyncpa [#allocation4], 1 }
 0x224   :  { %1421 = vsyncpa [#allocation4 + $0x1], 1 }
 0x225   :  { %1422 = vsyncpa [#allocation12], 1 }
 0x226   :  { %1424 = vsyncpa [#allocation12 + $0x1], 1 }

</bundles_post_ra>
